<compile_context>
chip_gen: v7x
topology: tpu7x:2x2x1
jax: 0.10.0
libtpu: 0.0.40
codegen_flags: <defaults>
</compile_context>

<pallas_src>
import jax
import jax.numpy as jnp
from jax import lax
from jax.experimental import pallas as pl
from jax.experimental.pallas import tpu as pltpu

# ---- Config (consistent with the GraphormerConfig fields used) ----
NUM_HEADS = 8
MULTI_HOP_MAX_DIST = 4
NUM_EDGES = 16
NUM_SPATIAL = 16
NUM_EDGE_DIS = 8
EDGE_TYPE = "multi_hop"


# ======================= Pallas kernel =======================

def _bias_map_kernel(tt_ref, spt_ref, idx_ref, sp_ref, inv_ref, o_ref):
    """Fused spatial + multi-hop-edge attention-bias map for a batch of graphs.

    tt_ref  [H, DVP] f32  folded (d, v) -> head table, transposed (DVP = D*V padded to x8)
    spt_ref [H, S]   f32  spatial_pos_encoder table, transposed
    idx_ref [DE, CB] i32  edge indices offset by d*V; CB = Gb*N*N (graph-major, then i*N+j)
    sp_ref  [1, CB]  i32  raw spatial_pos ids
    inv_ref [1, CB]  f32  1 / clipped spatial distance
    o_ref   [Gb, H, NN] f32  per-graph (head, i*N+j) bias map = edge_term*inv + spatial_term
    """
    dvp = tt_ref.shape[1]
    s = spt_ref.shape[1]
    de, cb = idx_ref.shape
    gb, _, nn = o_ref.shape

    # --- Edge path: in-kernel one-hot/count matmul replaces the HBM embedding gather.
    # counts[dv, m] = #{ (d,e)-plane : idx[plane, m] == dv }  (exact small ints).
    dv_iota = lax.broadcasted_iota(jnp.int32, (dvp, cb), 0)
    counts = jnp.zeros((dvp, cb), jnp.float32)
    for e in range(de):                       # DE = D*E is small and static
        counts = counts + (dv_iota == idx_ref[e:e + 1, :]).astype(jnp.float32)

    # --- Spatial-pos bias as a one-hot matmul (table row select never touches HBM).
    s_iota = lax.broadcasted_iota(jnp.int32, (s, cb), 0)
    sp_onehot = (s_iota == sp_ref[...]).astype(jnp.float32)

    eb = jnp.dot(tt_ref[...], counts,
                 preferred_element_type=jnp.float32,
                 precision=lax.Precision.HIGHEST)            # [H, CB]
    spb = jnp.dot(spt_ref[...], sp_onehot,
                  preferred_element_type=jnp.float32,
                  precision=lax.Precision.HIGHEST)           # [H, CB]

    inner = eb * inv_ref[...] + spb                          # [H, CB]

    # One wide, lane-dense [H, NN] store per graph (value layout matches the output tile).
    for g in range(gb):
        o_ref[g, :, :] = inner[:, g * nn:(g + 1) * nn]


# ======================= pallas_call wrapper =======================

def _pick_graphs_per_step(n_graphs, nn, max_gb=8):
    """Largest divisor of n_graphs (<= max_gb) whose flat column block is 128-lane aligned."""
    for gb in range(min(n_graphs, max_gb), 0, -1):
        if n_graphs % gb == 0 and (gb == n_graphs or (gb * nn) % 128 == 0):
            return gb
    return n_graphs


def fused_bias_map_pallas(tt, spt, idx, sp_idx, inv_sp, n_graphs, nn):
    H, DVP = tt.shape
    S = spt.shape[1]
    DE = idx.shape[0]
    gb = _pick_graphs_per_step(n_graphs, nn)
    cb = gb * nn
    grid = (n_graphs // gb,)
    return pl.pallas_call(
        _bias_map_kernel,
        out_shape=jax.ShapeDtypeStruct((n_graphs, H, nn), jnp.float32),
        grid_spec=pltpu.PrefetchScalarGridSpec(
            num_scalar_prefetch=0,
            grid=grid,
            in_specs=[
                pl.BlockSpec((H, DVP), lambda g: (0, 0)),      # folded edge table^T
                pl.BlockSpec((H, S), lambda g: (0, 0)),        # spatial table^T
                pl.BlockSpec((DE, cb), lambda g: (0, g)),      # edge indices (offset by d*V)
                pl.BlockSpec((1, cb), lambda g: (0, g)),       # spatial_pos ids
                pl.BlockSpec((1, cb), lambda g: (0, g)),       # 1 / spatial distance
            ],
            out_specs=pl.BlockSpec((gb, H, nn), lambda g: (g, 0, 0)),
        ),
        compiler_params=pltpu.CompilerParams(
            dimension_semantics=("parallel",),   # independent graph batches -> megacore-friendly
        ),
    )(tt, spt, idx, sp_idx, inv_sp)


# ======================= Module-equivalent forward =======================

def graphormer_graph_attn_bias(params, input_nodes, attn_bias, spatial_pos,
                               input_edges, attn_edge_type):
    del attn_edge_type  # unused in the 'multi_hop' branch
    G, N = input_nodes.shape[:2]
    H = NUM_HEADS
    D = MULTI_HOP_MAX_DIST
    V = params["edge_encoder"].shape[0]                     # num_edges + 1
    NN = N * N

    # ---- cheap index/scalar preprocessing (XLA glue) ----
    sp_div = jnp.where(spatial_pos == 0, 1, spatial_pos)
    sp_div = jnp.where(sp_div > 1, sp_div - 1, sp_div)
    sp_div = jnp.clip(sp_div, 0, D)
    inv_sp = (1.0 / sp_div.astype(jnp.float32)).reshape(1, G * NN)
    sp_idx = spatial_pos.astype(jnp.int32).reshape(1, G * NN)

    ie = input_edges[:, :, :, :D, :].astype(jnp.int32)      # [G, N, N, D, E]
    E = ie.shape[-1]
    ie = ie + (jnp.arange(D, dtype=jnp.int32) * V)[None, None, None, :, None]
    # Kernel wants the position axis minor (lane-major): [D*E, G*N*N].
    idx = jnp.transpose(ie, (3, 4, 0, 1, 2)).reshape(D * E, G * NN)

    # ---- folded per-(d, v) table: T[d, v, :] = edge_encoder[v] @ (W[d] / E) ----
    W = params["edge_dis_encoder"].reshape(-1, H, H)[:D].astype(jnp.float32)
    T = jnp.einsum("vh,dhk->dvk",
                   params["edge_encoder"].astype(jnp.float32), W / E,
                   precision=lax.Precision.HIGHEST)          # [D, V, H]
    tt = T.reshape(D * V, H).T                               # [H, D*V]
    dvp = -(-tt.shape[1] // 8) * 8                           # pad contraction dim to x8
    tt = jnp.pad(tt, ((0, 0), (0, dvp - tt.shape[1])))
    spt = params["spatial_pos_encoder"].astype(jnp.float32).T   # [H, S]

    # ---- fused Pallas kernel: gather-free edge contraction + spatial bias ----
    body = fused_bias_map_pallas(tt, spt, idx, sp_idx, inv_sp, G, NN)   # [G, H, N*N]

    # ---- tiny fused XLA epilogue: borders, virtual-token term, attn_bias (appears twice) ----
    ab = attn_bias.astype(jnp.float32)
    gab = 2.0 * ab[:, None, :, :] + jnp.pad(body.reshape(G, H, N, N),
                                            ((0, 0), (0, 0), (1, 0), (1, 0)))
    t = params["graph_token_virtual_distance"].reshape(1, H, 1).astype(jnp.float32)
    gab = gab.at[:, :, 1:, 0].add(t)
    gab = gab.at[:, :, 0, :].add(t)
    return gab                                               # [G, H, N+1, N+1]


# ======================= Pure-JAX reference (mirrors PyTorch, f32) =======================

def reference_forward(params, input_nodes, attn_bias, spatial_pos, input_edges,
                      attn_edge_type):
    del attn_edge_type
    G, N = input_nodes.shape[:2]
    H = NUM_HEADS

    gab = jnp.repeat(attn_bias[:, None], H, axis=1).astype(jnp.float32)   # [G,H,N1,N1]
    spb = jnp.transpose(params["spatial_pos_encoder"][spatial_pos], (0, 3, 1, 2))
    gab = gab.at[:, :, 1:, 1:].add(spb)
    t = params["graph_token_virtual_distance"].reshape(1, H, 1)
    gab = gab.at[:, :, 1:, 0].add(t)
    gab = gab.at[:, :, 0, :].add(t)

    sp_ = jnp.where(spatial_pos == 0, 1, spatial_pos)
    sp_ = jnp.where(sp_ > 1, sp_ - 1, sp_)
    sp_ = jnp.clip(sp_, 0, MULTI_HOP_MAX_DIST)
    ie = input_edges[:, :, :, :MULTI_HOP_MAX_DIST, :]
    ie = params["edge_encoder"][ie].mean(-2)                              # [G,N,N,D,H]
    D = ie.shape[-2]
    flat = jnp.transpose(ie, (3, 0, 1, 2, 4)).reshape(D, -1, H)
    W = params["edge_dis_encoder"].reshape(-1, H, H)[:D]
    flat = jnp.einsum("dmh,dhk->dmk", flat, W, precision=lax.Precision.HIGHEST)
    ie = jnp.transpose(flat.reshape(D, G, N, N, H), (1, 2, 3, 0, 4))
    ie = jnp.transpose(ie.sum(-2) / sp_.astype(jnp.float32)[..., None], (0, 3, 1, 2))
    gab = gab.at[:, :, 1:, 1:].add(ie)
    gab = gab + attn_bias[:, None]
    return gab


# ======================= Parameter init (deterministic, synthetic) =======================

def init_params(key):
    k1, k2, k3, k4 = jax.random.split(key, 4)
    edge = jax.random.normal(k1, (NUM_EDGES + 1, NUM_HEADS), jnp.float32)
    edge = edge.at[0].set(0.0)            # padding_idx=0
    spatial = jax.random.normal(k2, (NUM_SPATIAL, NUM_HEADS), jnp.float32)
    spatial = spatial.at[0].set(0.0)      # padding_idx=0
    gtvd = jax.random.normal(k3, (1, NUM_HEADS), jnp.float32)
    edge_dis = jax.random.normal(k4, (NUM_EDGE_DIS * NUM_HEADS * NUM_HEADS, 1), jnp.float32)
    return {"edge_encoder": edge, "spatial_pos_encoder": spatial,
            "graph_token_virtual_distance": gtvd, "edge_dis_encoder": edge_dis}


if __name__ == "__main__":
    key = jax.random.PRNGKey(0)
    kp, ka, ks, ke, kt = jax.random.split(key, 5)
    params = init_params(kp)

    G, N, E = 16, 8, 2           # 16 graphs -> 8 graphs/step, grid=(2,)
    N1 = N + 1
    input_nodes = jnp.zeros((G, N), jnp.int32)
    attn_bias = jax.random.normal(ka, (G, N1, N1), jnp.float32)
    spatial_pos = jax.random.randint(ks, (G, N, N), 0, NUM_SPATIAL)
    input_edges = jax.random.randint(ke, (G, N, N, MULTI_HOP_MAX_DIST, E), 0, NUM_EDGES + 1)
    attn_edge_type = jax.random.randint(kt, (G, N, N, E), 0, NUM_EDGES + 1)

    fwd = jax.jit(graphormer_graph_attn_bias)
    out = fwd(params, input_nodes, attn_bias, spatial_pos, input_edges, attn_edge_type)
    out = jax.block_until_ready(out)

    ref = reference_forward(params, input_nodes, attn_bias, spatial_pos, input_edges,
                            attn_edge_type)
    assert out.shape == (G, NUM_HEADS, N1, N1), out.shape
    max_err = float(jnp.max(jnp.abs(out - ref)))
    assert jnp.allclose(out, ref, atol=2e-3, rtol=2e-3), max_err
    print("KERNEL_OK")
</pallas_src>

<mosaic_0001>
module attributes {stable_mosaic.version = 11 : i64} {
  func.func @_bias_map_kernel(%arg0: i32, %arg1: memref<8x72xf32, #tpu.memory_space<vmem>>, %arg2: memref<8x16xf32, #tpu.memory_space<vmem>>, %arg3: memref<8x512xi32, #tpu.memory_space<vmem>>, %arg4: memref<1x512xi32, #tpu.memory_space<vmem>>, %arg5: memref<1x512xf32, #tpu.memory_space<vmem>>, %arg6: memref<8x8x64xf32, #tpu.memory_space<vmem>>) attributes {dimension_semantics = [#tpu.dimension_semantics<parallel>], iteration_bounds = array<i64: 2>, scalar_prefetch = 0 : i64, scratch_operands = 0 : i64, tpu.core_type = #tpu.core_type<tc>, window_params = [{pipeline_mode = #tpu.pipeline_mode<synchronous>, transform_indices = @transform_0, window_bounds = array<i64: 8, 72>}, {pipeline_mode = #tpu.pipeline_mode<synchronous>, transform_indices = @transform_1, window_bounds = array<i64: 8, 16>}, {transform_indices = @transform_2, window_bounds = array<i64: 8, 512>}, {transform_indices = @transform_3, window_bounds = array<i64: 1, 512>}, {transform_indices = @transform_4, window_bounds = array<i64: 1, 512>}, {transform_indices = @transform_5, window_bounds = array<i64: 8, 8, 64>}]} {
    %0 = tpu.iota {dimensions = array<i32: 0>} : vector<72x512xi32>
    %cst = arith.constant 0.000000e+00 : f32
    %1 = vector.broadcast %cst : f32 to vector<72x512xf32>
    %c0 = arith.constant 0 : index
    %c0_0 = arith.constant 0 : index
    %2 = vector.load %arg3[%c0, %c0_0] : memref<8x512xi32, #tpu.memory_space<vmem>>, vector<1x512xi32>
    %3 = vector.broadcast %2 : vector<1x512xi32> to vector<72x512xi32>
    %4 = arith.cmpi eq, %0, %3 : vector<72x512xi32>
    %5 = arith.extui %4 : vector<72x512xi1> to vector<72x512xi32>
    %6 = arith.sitofp %5 : vector<72x512xi32> to vector<72x512xf32>
    %7 = arith.addf %1, %6 : vector<72x512xf32>
    %c1 = arith.constant 1 : index
    %c0_1 = arith.constant 0 : index
    %8 = vector.load %arg3[%c1, %c0_1] : memref<8x512xi32, #tpu.memory_space<vmem>>, vector<1x512xi32>
    %9 = vector.broadcast %8 : vector<1x512xi32> to vector<72x512xi32>
    %10 = arith.cmpi eq, %0, %9 : vector<72x512xi32>
    %11 = arith.extui %10 : vector<72x512xi1> to vector<72x512xi32>
    %12 = arith.sitofp %11 : vector<72x512xi32> to vector<72x512xf32>
    %13 = arith.addf %7, %12 : vector<72x512xf32>
    %c2 = arith.constant 2 : index
    %c0_2 = arith.constant 0 : index
    %14 = vector.load %arg3[%c2, %c0_2] : memref<8x512xi32, #tpu.memory_space<vmem>>, vector<1x512xi32>
    %15 = vector.broadcast %14 : vector<1x512xi32> to vector<72x512xi32>
    %16 = arith.cmpi eq, %0, %15 : vector<72x512xi32>
    %17 = arith.extui %16 : vector<72x512xi1> to vector<72x512xi32>
    %18 = arith.sitofp %17 : vector<72x512xi32> to vector<72x512xf32>
    %19 = arith.addf %13, %18 : vector<72x512xf32>
    %c3 = arith.constant 3 : index
    %c0_3 = arith.constant 0 : index
    %20 = vector.load %arg3[%c3, %c0_3] : memref<8x512xi32, #tpu.memory_space<vmem>>, vector<1x512xi32>
    %21 = vector.broadcast %20 : vector<1x512xi32> to vector<72x512xi32>
    %22 = arith.cmpi eq, %0, %21 : vector<72x512xi32>
    %23 = arith.extui %22 : vector<72x512xi1> to vector<72x512xi32>
    %24 = arith.sitofp %23 : vector<72x512xi32> to vector<72x512xf32>
    %25 = arith.addf %19, %24 : vector<72x512xf32>
    %c4 = arith.constant 4 : index
    %c0_4 = arith.constant 0 : index
    %26 = vector.load %arg3[%c4, %c0_4] : memref<8x512xi32, #tpu.memory_space<vmem>>, vector<1x512xi32>
    %27 = vector.broadcast %26 : vector<1x512xi32> to vector<72x512xi32>
    %28 = arith.cmpi eq, %0, %27 : vector<72x512xi32>
    %29 = arith.extui %28 : vector<72x512xi1> to vector<72x512xi32>
    %30 = arith.sitofp %29 : vector<72x512xi32> to vector<72x512xf32>
    %31 = arith.addf %25, %30 : vector<72x512xf32>
    %c5 = arith.constant 5 : index
    %c0_5 = arith.constant 0 : index
    %32 = vector.load %arg3[%c5, %c0_5] : memref<8x512xi32, #tpu.memory_space<vmem>>, vector<1x512xi32>
    %33 = vector.broadcast %32 : vector<1x512xi32> to vector<72x512xi32>
    %34 = arith.cmpi eq, %0, %33 : vector<72x512xi32>
    %35 = arith.extui %34 : vector<72x512xi1> to vector<72x512xi32>
    %36 = arith.sitofp %35 : vector<72x512xi32> to vector<72x512xf32>
    %37 = arith.addf %31, %36 : vector<72x512xf32>
    %c6 = arith.constant 6 : index
    %c0_6 = arith.constant 0 : index
    %38 = vector.load %arg3[%c6, %c0_6] : memref<8x512xi32, #tpu.memory_space<vmem>>, vector<1x512xi32>
    %39 = vector.broadcast %38 : vector<1x512xi32> to vector<72x512xi32>
    %40 = arith.cmpi eq, %0, %39 : vector<72x512xi32>
    %41 = arith.extui %40 : vector<72x512xi1> to vector<72x512xi32>
    %42 = arith.sitofp %41 : vector<72x512xi32> to vector<72x512xf32>
    %43 = arith.addf %37, %42 : vector<72x512xf32>
    %c7 = arith.constant 7 : index
    %c0_7 = arith.constant 0 : index
    %44 = vector.load %arg3[%c7, %c0_7] : memref<8x512xi32, #tpu.memory_space<vmem>>, vector<1x512xi32>
    %45 = vector.broadcast %44 : vector<1x512xi32> to vector<72x512xi32>
    %46 = arith.cmpi eq, %0, %45 : vector<72x512xi32>
    %47 = arith.extui %46 : vector<72x512xi1> to vector<72x512xi32>
    %48 = arith.sitofp %47 : vector<72x512xi32> to vector<72x512xf32>
    %49 = arith.addf %43, %48 : vector<72x512xf32>
    %50 = tpu.iota {dimensions = array<i32: 0>} : vector<16x512xi32>
    %c0_8 = arith.constant 0 : index
    %c0_9 = arith.constant 0 : index
    %51 = vector.load %arg4[%c0_8, %c0_9] : memref<1x512xi32, #tpu.memory_space<vmem>>, vector<1x512xi32>
    %52 = vector.broadcast %51 : vector<1x512xi32> to vector<16x512xi32>
    %53 = arith.cmpi eq, %50, %52 : vector<16x512xi32>
    %54 = arith.extui %53 : vector<16x512xi1> to vector<16x512xi32>
    %55 = arith.sitofp %54 : vector<16x512xi32> to vector<16x512xf32>
    %c0_10 = arith.constant 0 : index
    %c0_11 = arith.constant 0 : index
    %56 = vector.load %arg1[%c0_10, %c0_11] : memref<8x72xf32, #tpu.memory_space<vmem>>, vector<8x72xf32>
    %cst_12 = arith.constant dense<0.000000e+00> : vector<8x512xf32>
    %57 = tpu.matmul %56, %49, %cst_12 {dimension_numbers = #tpu.dot_dimension_numbers<[1], [0], [0], [1], [0, 0, 1, 1], [], []>, precision = #tpu.contract_precision<fp32>} : vector<8x72xf32>, vector<72x512xf32>, vector<8x512xf32> -> vector<8x512xf32>
    %c0_13 = arith.constant 0 : index
    %c0_14 = arith.constant 0 : index
    %58 = vector.load %arg2[%c0_13, %c0_14] : memref<8x16xf32, #tpu.memory_space<vmem>>, vector<8x16xf32>
    %cst_15 = arith.constant dense<0.000000e+00> : vector<8x512xf32>
    %59 = tpu.matmul %58, %55, %cst_15 {dimension_numbers = #tpu.dot_dimension_numbers<[1], [0], [0], [1], [0, 0, 1, 1], [], []>, precision = #tpu.contract_precision<fp32>} : vector<8x16xf32>, vector<16x512xf32>, vector<8x512xf32> -> vector<8x512xf32>
    %c0_16 = arith.constant 0 : index
    %c0_17 = arith.constant 0 : index
    %60 = vector.load %arg5[%c0_16, %c0_17] : memref<1x512xf32, #tpu.memory_space<vmem>>, vector<1x512xf32>
    %61 = vector.broadcast %60 : vector<1x512xf32> to vector<8x512xf32>
    %62 = arith.mulf %57, %61 : vector<8x512xf32>
    %63 = arith.addf %62, %59 : vector<8x512xf32>
    %64 = vector.extract_strided_slice %63 {offsets = [0, 0], sizes = [8, 64], strides = [1, 1]} : vector<8x512xf32> to vector<8x64xf32>
    %c0_18 = arith.constant 0 : index
    %c0_19 = arith.constant 0 : index
    %c0_20 = arith.constant 0 : index
    %65 = vector.load %arg6[%c0_18, %c0_19, %c0_20] : memref<8x8x64xf32, #tpu.memory_space<vmem>>, vector<1x8x64xf32>
    %66 = vector.shape_cast %65 : vector<1x8x64xf32> to vector<8x64xf32>
    %67 = vector.shape_cast %64 : vector<8x64xf32> to vector<1x8x64xf32>
    tpu.vector_store %arg6[%c0_18, %c0_19, %c0_20], %67 {strides = array<i32>} : memref<8x8x64xf32, #tpu.memory_space<vmem>>, vector<1x8x64xf32>,
    %68 = vector.extract_strided_slice %63 {offsets = [0, 64], sizes = [8, 64], strides = [1, 1]} : vector<8x512xf32> to vector<8x64xf32>
    %c1_21 = arith.constant 1 : index
    %c0_22 = arith.constant 0 : index
    %c0_23 = arith.constant 0 : index
    %69 = vector.load %arg6[%c1_21, %c0_22, %c0_23] : memref<8x8x64xf32, #tpu.memory_space<vmem>>, vector<1x8x64xf32>
    %70 = vector.shape_cast %69 : vector<1x8x64xf32> to vector<8x64xf32>
    %71 = vector.shape_cast %68 : vector<8x64xf32> to vector<1x8x64xf32>
    tpu.vector_store %arg6[%c1_21, %c0_22, %c0_23], %71 {strides = array<i32>} : memref<8x8x64xf32, #tpu.memory_space<vmem>>, vector<1x8x64xf32>,
    %72 = vector.extract_strided_slice %63 {offsets = [0, 128], sizes = [8, 64], strides = [1, 1]} : vector<8x512xf32> to vector<8x64xf32>
    %c2_24 = arith.constant 2 : index
    %c0_25 = arith.constant 0 : index
    %c0_26 = arith.constant 0 : index
    %73 = vector.load %arg6[%c2_24, %c0_25, %c0_26] : memref<8x8x64xf32, #tpu.memory_space<vmem>>, vector<1x8x64xf32>
    %74 = vector.shape_cast %73 : vector<1x8x64xf32> to vector<8x64xf32>
    %75 = vector.shape_cast %72 : vector<8x64xf32> to vector<1x8x64xf32>
    tpu.vector_store %arg6[%c2_24, %c0_25, %c0_26], %75 {strides = array<i32>} : memref<8x8x64xf32, #tpu.memory_space<vmem>>, vector<1x8x64xf32>,
    %76 = vector.extract_strided_slice %63 {offsets = [0, 192], sizes = [8, 64], strides = [1, 1]} : vector<8x512xf32> to vector<8x64xf32>
    %c3_27 = arith.constant 3 : index
    %c0_28 = arith.constant 0 : index
    %c0_29 = arith.constant 0 : index
    %77 = vector.load %arg6[%c3_27, %c0_28, %c0_29] : memref<8x8x64xf32, #tpu.memory_space<vmem>>, vector<1x8x64xf32>
    %78 = vector.shape_cast %77 : vector<1x8x64xf32> to vector<8x64xf32>
    %79 = vector.shape_cast %76 : vector<8x64xf32> to vector<1x8x64xf32>
    tpu.vector_store %arg6[%c3_27, %c0_28, %c0_29], %79 {strides = array<i32>} : memref<8x8x64xf32, #tpu.memory_space<vmem>>, vector<1x8x64xf32>,
    %80 = vector.extract_strided_slice %63 {offsets = [0, 256], sizes = [8, 64], strides = [1, 1]} : vector<8x512xf32> to vector<8x64xf32>
    %c4_30 = arith.constant 4 : index
    %c0_31 = arith.constant 0 : index
    %c0_32 = arith.constant 0 : index
    %81 = vector.load %arg6[%c4_30, %c0_31, %c0_32] : memref<8x8x64xf32, #tpu.memory_space<vmem>>, vector<1x8x64xf32>
    %82 = vector.shape_cast %81 : vector<1x8x64xf32> to vector<8x64xf32>
    %83 = vector.shape_cast %80 : vector<8x64xf32> to vector<1x8x64xf32>
    tpu.vector_store %arg6[%c4_30, %c0_31, %c0_32], %83 {strides = array<i32>} : memref<8x8x64xf32, #tpu.memory_space<vmem>>, vector<1x8x64xf32>,
    %84 = vector.extract_strided_slice %63 {offsets = [0, 320], sizes = [8, 64], strides = [1, 1]} : vector<8x512xf32> to vector<8x64xf32>
    %c5_33 = arith.constant 5 : index
    %c0_34 = arith.constant 0 : index
    %c0_35 = arith.constant 0 : index
    %85 = vector.load %arg6[%c5_33, %c0_34, %c0_35] : memref<8x8x64xf32, #tpu.memory_space<vmem>>, vector<1x8x64xf32>
    %86 = vector.shape_cast %85 : vector<1x8x64xf32> to vector<8x64xf32>
    %87 = vector.shape_cast %84 : vector<8x64xf32> to vector<1x8x64xf32>
    tpu.vector_store %arg6[%c5_33, %c0_34, %c0_35], %87 {strides = array<i32>} : memref<8x8x64xf32, #tpu.memory_space<vmem>>, vector<1x8x64xf32>,
    %88 = vector.extract_strided_slice %63 {offsets = [0, 384], sizes = [8, 64], strides = [1, 1]} : vector<8x512xf32> to vector<8x64xf32>
    %c6_36 = arith.constant 6 : index
    %c0_37 = arith.constant 0 : index
    %c0_38 = arith.constant 0 : index
    %89 = vector.load %arg6[%c6_36, %c0_37, %c0_38] : memref<8x8x64xf32, #tpu.memory_space<vmem>>, vector<1x8x64xf32>
    %90 = vector.shape_cast %89 : vector<1x8x64xf32> to vector<8x64xf32>
    %91 = vector.shape_cast %88 : vector<8x64xf32> to vector<1x8x64xf32>
    tpu.vector_store %arg6[%c6_36, %c0_37, %c0_38], %91 {strides = array<i32>} : memref<8x8x64xf32, #tpu.memory_space<vmem>>, vector<1x8x64xf32>,
    %92 = vector.extract_strided_slice %63 {offsets = [0, 448], sizes = [8, 64], strides = [1, 1]} : vector<8x512xf32> to vector<8x64xf32>
    %c7_39 = arith.constant 7 : index
    %c0_40 = arith.constant 0 : index
    %c0_41 = arith.constant 0 : index
    %93 = vector.load %arg6[%c7_39, %c0_40, %c0_41] : memref<8x8x64xf32, #tpu.memory_space<vmem>>, vector<1x8x64xf32>
    %94 = vector.shape_cast %93 : vector<1x8x64xf32> to vector<8x64xf32>
    %95 = vector.shape_cast %92 : vector<8x64xf32> to vector<1x8x64xf32>
    tpu.vector_store %arg6[%c7_39, %c0_40, %c0_41], %95 {strides = array<i32>} : memref<8x8x64xf32, #tpu.memory_space<vmem>>, vector<1x8x64xf32>,
    return
  }
  func.func @transform_0(%arg0: i32) -> (i32, i32) {
    %c0_i32 = arith.constant 0 : i32
    %c0_i32_0 = arith.constant 0 : i32
    %c0_i32_1 = arith.constant 0 : i32
    return %c0_i32, %c0_i32_0 : i32, i32
  }
  func.func @transform_1(%arg0: i32) -> (i32, i32) {
    %c0_i32 = arith.constant 0 : i32
    %c0_i32_0 = arith.constant 0 : i32
    %c0_i32_1 = arith.constant 0 : i32
    return %c0_i32, %c0_i32_0 : i32, i32
  }
  func.func @transform_2(%arg0: i32) -> (i32, i32) {
    %c0_i32 = arith.constant 0 : i32
    %c0_i32_0 = arith.constant 0 : i32
    return %c0_i32, %arg0 : i32, i32
  }
  func.func @transform_3(%arg0: i32) -> (i32, i32) {
    %c0_i32 = arith.constant 0 : i32
    %c0_i32_0 = arith.constant 0 : i32
    return %c0_i32, %arg0 : i32, i32
  }
  func.func @transform_4(%arg0: i32) -> (i32, i32) {
    %c0_i32 = arith.constant 0 : i32
    %c0_i32_0 = arith.constant 0 : i32
    return %c0_i32, %arg0 : i32, i32
  }
  func.func @transform_5(%arg0: i32) -> (i32, i32, i32) {
    %c0_i32 = arith.constant 0 : i32
    %c0_i32_0 = arith.constant 0 : i32
    %c0_i32_1 = arith.constant 0 : i32
    return %arg0, %c0_i32, %c0_i32_0 : i32, i32, i32
  }
}

</mosaic_0001>

<bundles_post_ra>
// kernel: graphormer_graph_attn_bias.1
= control target key start
LH: loop header
LB: loop body
LE: loop exit
PB: predicated region body
PF: predicated region fallthrough
CT: control target
= control target key end

     0   :  { %s4765_s18 = smov 0   ;;  %s6606_s0 = inlined_call_operand.vmem [shape: f32[8,72], index: 0, kind: input, shape index: {}]   ;;  %s6607_s1 = inlined_call_operand.vmem [shape: f32[8,16], index: 1, kind: input, shape index: {}]   ;;  %s6608_s2 = inlined_call_operand.vmem [shape: s32[8,1024], index: 2, kind: input, shape index: {}]   ;;  %s6609_s3 = inlined_call_operand.vmem [shape: s32[1,1024], index: 3, kind: input, shape index: {}]   ;;  %s6610_s4 = inlined_call_operand.vmem [shape: f32[1,1024], index: 4, kind: input, shape index: {}]   ;;  %s6611_s5 = inlined_call_operand.vmem [shape: f32[16,8,64], index: 5, kind: output, shape index: {}]  }
   0x1 LB: > { %s4086_s19 = sadd.s32 4294967295, %s4730_s18   ;;  %p4090_p0 = scmp.ge.s32.totalorder %s4730_s18, 1  ;;  %s4730_s18 = sphi %s4765_s18, %s15_s18  }
   0x2   : > { %p208_p1 = scmp.lt.s32.totalorder %s4730_s18, 3 }
   0x4   : > { %p209_p2 = pnand %p4090_p0, %p208_p1 }
   0x6   : > { %212 = sbr.rel (%p209_p2) target bundleno = 753 (0x2f1), region = 40 }
   0xd   : > { %s4091_s20 = sshll.u32 %s4086_s19, 2  ;;  %v266_v0 = vlaneseq  ;;  %v6678_v1 = vmov 0.0   ;;  %s4095_s7 = sshll.u32 %s4086_s19, 3 }
   0xe   : > { %p245_p3 = scmp.lt.s32.totalorder %s4091_s20, 7  ;;  %1699 = vmatprep.mubr.f32.mxu0 %v6678_v1  ;;  %2372 = vmatprep.mubr.f32.mxu1 %v6678_v1  ;;  %p261_p4 = scmp.lt.s32.totalorder %s4095_s7, 15 }
   0xf   : > { %v4777_v2 = vshrl.u32 %v266_v0, 7  ;;  %s4734_s15 = smov 64  }
  0x10   : > { %s6851_s20 = smov (!%p245_p3, %s4091_s20), 7  ;;  %s6853_s7 = smov (!%p261_p4, %s4095_s7), 15 }
  0x11   : > { %6718 = vst [vmem:[#allocation2_spill] sm:$0xff] %v4777_v2  ;;  %v4782_v3 = vsub.s32 1, %v4777_v2  ;;  %v4785_v4 = vsub.s32 3, %v4777_v2  ;;  %s4092_s21 = sshll.u32 %s6851_s20, 3  ;;  %v4789_v5 = vadd.s32 8, %v4777_v2  ;;  %v4792_v6 = vsub.s32 0, %v4777_v2  ;;  %s253_s29 = scalar_lea.vmem %s6609_s3, %s6851_s20 }
  0x12   : > { %v4795_v7 = vsub.s32 2, %v4777_v2  ;;  %s4800_s24 = scalar_lea.vmem %s6608_s2, %s4092_s21  ;;  %v4803_v8 = vadd.s32 16, %v4777_v2  ;;  %v4806_v9 = vadd.s32 24, %v4777_v2  ;;  %v4809_v10 = vadd.s32 32, %v4777_v2  ;;  %s258_s10 = scalar_lea.vmem %s6610_s4, %s6851_s20 }
  0x13   : > { %6719 = vst [vmem:[#allocation3_spill] sm:$0xff] %v4782_v3  ;;  %6720 = vst [vmem:[#allocation4_spill] sm:$0xff] %v4785_v4  ;;  %v4812_v11 = vadd.s32 40, %v4777_v2  ;;  %v4815_v12 = vld [vmem:[%s4800_s24] ss:$8 sm:$0xf] }
  0x14   : > { %6721 = vst [vmem:[#allocation5_spill] sm:$0xff] %v4789_v5  ;;  %6722 = vst [vmem:[#allocation6_spill] sm:$0xff] %v4792_v6  ;;  %v4818_v13 = vld [vmem:[%s4800_s24 + $0x1] ss:$8 sm:$0xf]  ;;  %v4822_v14 = vrot.slane %v4815_v12, %v4782_v3  ;;  %v4836_v18 = vrot.slane %v4815_v12, %v4785_v4  ;;  %s4096_s11 = sshll.u32 %s6853_s7, 3 }
  0x15   : > { %6723 = vst [vmem:[#allocation7_spill] sm:$0xff] %v4795_v7  ;;  %v4826_v15 = vrot.slane %v4818_v13, %v4782_v3  ;;  %v4829_v16 = vld [vmem:[%s4800_s24 + $0x2] ss:$8 sm:$0xf]  ;;  %v4840_v19 = vrot.slane %v4818_v13, %v4785_v4  ;;  %s264_s14 = scalar_lea.vmem %s6611_s5, %s4096_s11 }
  0x16   : > { %v4832_v17 = vld [vmem:[%s4800_s24 + $0x3] ss:$8 sm:$0xf]  ;;  %v4844_v20 = vrot.slane %v4829_v16, %v4782_v3  ;;  %v4852_v22 = vrot.slane %v4829_v16, %v4785_v4  ;;  %vm294_vm0 = vcmp.eq.s32.totalorder %v4777_v2, %v4822_v14  ;;  %vm298_vm1 = vcmp.eq.s32.totalorder %v4789_v5, %v4822_v14  ;;  %v4867_v24 = vld [vmem:[%s4800_s24 + $0x4] ss:$8 sm:$0xf] }
  0x17   : > { %v4848_v21 = vrot.slane %v4832_v17, %v4782_v3  ;;  %v4856_v23 = vrot.slane %v4832_v17, %v4785_v4  ;;  %vm456_vm2 = vcmp.eq.s32.totalorder %v4777_v2, %v4826_v15  ;;  %vm460_vm3 = vcmp.eq.s32.totalorder %v4789_v5, %v4826_v15  ;;  %v4870_v25 = vld [vmem:[%s4800_s24 + $0x5] ss:$8 sm:$0xf]  ;;  %v4881_v32 = vld [vmem:[%s4800_s24 + $0x6] ss:$8 sm:$0xf] }
  0x18   : > { %v4098_v26 = vsel %vm294_vm0, 1.0, %v6678_v1  ;;  %v4102_v27 = vsel %vm298_vm1, 1.0, %v6678_v1  ;;  %v4135_v28 = vsel %vm456_vm2, 1.0, %v6678_v1  ;;  %v4139_v29 = vsel %vm460_vm3, 1.0, %v6678_v1 }
  0x19   : > { %v564_v30 = vadd.f32 %v4135_v28, %v4098_v26  ;;  %v568_v31 = vadd.f32 %v4139_v29, %v4102_v27  ;;  %vm618_vm4 = vcmp.eq.s32.totalorder %v4777_v2, %v4844_v20  ;;  %vm622_vm5 = vcmp.eq.s32.totalorder %v4789_v5, %v4844_v20  ;;  %v4884_v33 = vld [vmem:[%s4800_s24 + $0x7] ss:$8 sm:$0xf] }
  0x1a   : > { %v4172_v34 = vsel %vm618_vm4, 1.0, %v6678_v1  ;;  %v4176_v35 = vsel %vm622_vm5, 1.0, %v6678_v1  ;;  %vm780_vm6 = vcmp.eq.s32.totalorder %v4777_v2, %v4848_v21  ;;  %vm784_vm7 = vcmp.eq.s32.totalorder %v4789_v5, %v4848_v21 }
  0x1b   : > { %v726_v36 = vadd.f32 %v4172_v34, %v564_v30  ;;  %v730_v37 = vadd.f32 %v4176_v35, %v568_v31  ;;  %v4209_v38 = vsel %vm780_vm6, 1.0, %v6678_v1  ;;  %v4213_v39 = vsel %vm784_vm7, 1.0, %v6678_v1 }
  0x1c   : > { %v4896_v40 = vrot.slane %v4867_v24, %v4782_v3  ;;  %v4900_v41 = vrot.slane %v4870_v25, %v4782_v3  ;;  %v4904_v42 = vrot.slane %v4881_v32, %v4782_v3  ;;  %v4908_v43 = vrot.slane %v4884_v33, %v4782_v3 }
  0x1d   : > { %v888_v44 = vadd.f32 %v4209_v38, %v726_v36  ;;  %v892_v45 = vadd.f32 %v4213_v39, %v730_v37  ;;  %vm296_vm8 = vcmp.eq.s32.totalorder %v4777_v2, %v4836_v18  ;;  %vm300_vm9 = vcmp.eq.s32.totalorder %v4789_v5, %v4836_v18 }
  0x1e   : > { %vm942_vm10 = vcmp.eq.s32.totalorder %v4777_v2, %v4896_v40  ;;  %vm946_vm11 = vcmp.eq.s32.totalorder %v4789_v5, %v4896_v40  ;;  %vm1104_vm12 = vcmp.eq.s32.totalorder %v4777_v2, %v4900_v41  ;;  %vm1108_vm13 = vcmp.eq.s32.totalorder %v4789_v5, %v4900_v41 }
  0x1f   : > { %v4246_v46 = vsel %vm942_vm10, 1.0, %v6678_v1  ;;  %v4250_v47 = vsel %vm946_vm11, 1.0, %v6678_v1  ;;  %v4283_v48 = vsel %vm1104_vm12, 1.0, %v6678_v1  ;;  %v4287_v49 = vsel %vm1108_vm13, 1.0, %v6678_v1 }
  0x20   : > { %v1050_v50 = vadd.f32 %v4246_v46, %v888_v44  ;;  %v1054_v51 = vadd.f32 %v4250_v47, %v892_v45  ;;  %vm1266_vm14 = vcmp.eq.s32.totalorder %v4777_v2, %v4904_v42  ;;  %vm1270_vm15 = vcmp.eq.s32.totalorder %v4789_v5, %v4904_v42 }
  0x21   : > { %v4320_v52 = vsel %vm1266_vm14, 1.0, %v6678_v1  ;;  %v4324_v53 = vsel %vm1270_vm15, 1.0, %v6678_v1  ;;  %vm1428_vm0 = vcmp.eq.s32.totalorder %v4777_v2, %v4908_v43  ;;  %vm1432_vm1 = vcmp.eq.s32.totalorder %v4789_v5, %v4908_v43 }
  0x22   : > { %v1212_v54 = vadd.f32 %v4283_v48, %v1050_v50  ;;  %v1216_v55 = vadd.f32 %v4287_v49, %v1054_v51  ;;  %v4357_v56 = vsel %vm1428_vm0, 1.0, %v6678_v1  ;;  %v4361_v57 = vsel %vm1432_vm1, 1.0, %v6678_v1 }
  0x23   : > { %v4100_v58 = vsel %vm296_vm8, 1.0, %v6678_v1  ;;  %v4104_v59 = vsel %vm300_vm9, 1.0, %v6678_v1  ;;  %vm458_vm2 = vcmp.eq.s32.totalorder %v4777_v2, %v4840_v19  ;;  %vm462_vm3 = vcmp.eq.s32.totalorder %v4789_v5, %v4840_v19 }
  0x24   : > { %v1374_v60 = vadd.f32 %v4320_v52, %v1212_v54  ;;  %v1378_v61 = vadd.f32 %v4324_v53, %v1216_v55  ;;  %v4137_v62 = vsel %vm458_vm2, 1.0, %v6678_v1  ;;  %v4141_v63 = vsel %vm462_vm3, 1.0, %v6678_v1 }
  0x25   : > { %v566_v0 = vadd.f32 %v4137_v62, %v4100_v58  ;;  %v570_v26 = vadd.f32 %v4141_v63, %v4104_v59  ;;  %vm620_vm4 = vcmp.eq.s32.totalorder %v4777_v2, %v4852_v22  ;;  %vm624_vm5 = vcmp.eq.s32.totalorder %v4789_v5, %v4852_v22 }
  0x26   : > { %v1536_v27 = vadd.f32 %v4357_v56, %v1374_v60  ;;  %v1540_v28 = vadd.f32 %v4361_v57, %v1378_v61  ;;  %v4174_v29 = vsel %vm620_vm4, 1.0, %v6678_v1  ;;  %v4178_v30 = vsel %vm624_vm5, 1.0, %v6678_v1 }
  0x27   : > { %v728_v31 = vadd.f32 %v4174_v29, %v566_v0  ;;  %v732_v34 = vadd.f32 %v4178_v30, %v570_v26  ;;  %vm782_vm6 = vcmp.eq.s32.totalorder %v4777_v2, %v4856_v23  ;;  %vm786_vm7 = vcmp.eq.s32.totalorder %v4789_v5, %v4856_v23 }
  0x28   : > { %v1617_v35 = vand.u32 4294901760, %v1536_v27  ;;  %v1621_v36 = vand.u32 4294901760, %v1540_v28  ;;  %v4211_v37 = vsel %vm782_vm6, 1.0, %v6678_v1  ;;  %v4215_v38 = vsel %vm786_vm7, 1.0, %v6678_v1 }
  0x29   : > { %v890_v39 = vadd.f32 %v4211_v37, %v728_v31  ;;  %v894_v44 = vadd.f32 %v4215_v38, %v732_v34  ;;  %v4966_v45 = vrot.slane %v4867_v24, %v4785_v4  ;;  %v4970_v46 = vrot.slane %v4870_v25, %v4785_v4 }
  0x2a   : > { %v4972_v47 = vpack.c.bf16 %v1621_v36, %v1617_v35  ;;  %v4974_v48 = vsub.f32 %v1536_v27, %v1617_v35  ;;  %v4976_v49 = vsub.f32 %v1540_v28, %v1621_v36  ;;  %v4980_v50 = vrot.slane %v4881_v32, %v4785_v4 }
  0x2b   : > { %vm944_vm8 = vcmp.eq.s32.totalorder %v4777_v2, %v4966_v45  ;;  %vm948_vm9 = vcmp.eq.s32.totalorder %v4789_v5, %v4966_v45  ;;  %vm1106_vm10 = vcmp.eq.s32.totalorder %v4777_v2, %v4970_v46  ;;  %vm1110_vm11 = vcmp.eq.s32.totalorder %v4789_v5, %v4970_v46 }
  0x2c   : > { %6724 = vst [vmem:[#allocation8_spill] sm:$0xff] %v4972_v47  ;;  %4434 = vmatprep.subr.bf16.mxu0 %v4972_v47  ;;  %v4248_v51 = vsel %vm944_vm8, 1.0, %v6678_v1  ;;  %v4252_v52 = vsel %vm948_vm9, 1.0, %v6678_v1  ;;  %v4285_v53 = vsel %vm1106_vm10, 1.0, %v6678_v1  ;;  %v4289_v54 = vsel %vm1110_vm11, 1.0, %v6678_v1 }
  0x2d   : > { %v1052_v55 = vadd.f32 %v4248_v51, %v890_v39  ;;  %v1056_v56 = vadd.f32 %v4252_v52, %v894_v44  ;;  %vm1268_vm12 = vcmp.eq.s32.totalorder %v4777_v2, %v4980_v50  ;;  %vm1272_vm13 = vcmp.eq.s32.totalorder %v4789_v5, %v4980_v50 }
  0x2e   : > { %v4322_v57 = vsel %vm1268_vm12, 1.0, %v6678_v1  ;;  %v4326_v58 = vsel %vm1272_vm13, 1.0, %v6678_v1  ;;  %v5003_v59 = vrot.slane %v4884_v33, %v4785_v4  ;;  %v5007_v60 = vrot.slane %v4815_v12, %v4792_v6 }
  0x2f   : > { %v1214_v61 = vadd.f32 %v4285_v53, %v1052_v55  ;;  %v1218_v62 = vadd.f32 %v4289_v54, %v1056_v56  ;;  %v5011_v63 = vrot.slane %v4818_v13, %v4792_v6  ;;  %v5015_v0 = vrot.slane %v4829_v16, %v4792_v6 }
  0x30   : > { %vm1430_vm14 = vcmp.eq.s32.totalorder %v4777_v2, %v5003_v59  ;;  %vm1434_vm15 = vcmp.eq.s32.totalorder %v4789_v5, %v5003_v59  ;;  %vm293_vm0 = vcmp.eq.s32.totalorder %v4777_v2, %v5007_v60  ;;  %vm297_vm1 = vcmp.eq.s32.totalorder %v4789_v5, %v5007_v60 }
  0x31   : > { %v1376_v26 = vadd.f32 %v4322_v57, %v1214_v61  ;;  %v1380_v27 = vadd.f32 %v4326_v58, %v1218_v62  ;;  %v4359_v28 = vsel %vm1430_vm14, 1.0, %v6678_v1  ;;  %v4363_v29 = vsel %vm1434_vm15, 1.0, %v6678_v1 }
  0x32   : > { %v4097_v30 = vsel %vm293_vm0, 1.0, %v6678_v1  ;;  %v4101_v31 = vsel %vm297_vm1, 1.0, %v6678_v1  ;;  %vm455_vm2 = vcmp.eq.s32.totalorder %v4777_v2, %v5011_v63  ;;  %vm459_vm3 = vcmp.eq.s32.totalorder %v4789_v5, %v5011_v63 }
  0x33   : > { %v1538_v34 = vadd.f32 %v4359_v28, %v1376_v26  ;;  %v1542_v35 = vadd.f32 %v4363_v29, %v1380_v27  ;;  %v4134_v36 = vsel %vm455_vm2, 1.0, %v6678_v1  ;;  %v4138_v37 = vsel %vm459_vm3, 1.0, %v6678_v1 }
  0x34   : > { %v563_v38 = vadd.f32 %v4134_v36, %v4097_v30  ;;  %v567_v39 = vadd.f32 %v4138_v37, %v4101_v31  ;;  %vm617_vm4 = vcmp.eq.s32.totalorder %v4777_v2, %v5015_v0  ;;  %vm621_vm5 = vcmp.eq.s32.totalorder %v4789_v5, %v5015_v0 }
  0x35   : > { %v2290_v44 = vand.u32 4294901760, %v1538_v34  ;;  %v2294_v51 = vand.u32 4294901760, %v1542_v35  ;;  %v4171_v52 = vsel %vm617_vm4, 1.0, %v6678_v1  ;;  %v4175_v53 = vsel %vm621_vm5, 1.0, %v6678_v1 }
  0x36   : > { %v725_v54 = vadd.f32 %v4171_v52, %v563_v38  ;;  %v729_v55 = vadd.f32 %v4175_v53, %v567_v39  ;;  %v5043_v56 = vrot.slane %v4832_v17, %v4792_v6  ;;  %v5047_v57 = vrot.slane %v4867_v24, %v4792_v6 }
  0x37   : > { %v5049_v58 = vpack.c.bf16 %v2294_v51, %v2290_v44  ;;  %v5051_v61 = vsub.f32 %v1538_v34, %v2290_v44  ;;  %v5053_v62 = vsub.f32 %v1542_v35, %v2294_v51  ;;  %v5057_v26 = vrot.slane %v4870_v25, %v4792_v6 }
  0x38   : > { %vm779_vm6 = vcmp.eq.s32.totalorder %v4777_v2, %v5043_v56  ;;  %vm783_vm7 = vcmp.eq.s32.totalorder %v4789_v5, %v5043_v56  ;;  %vm941_vm8 = vcmp.eq.s32.totalorder %v4777_v2, %v5047_v57  ;;  %vm945_vm9 = vcmp.eq.s32.totalorder %v4789_v5, %v5047_v57 }
  0x39   : > { %6725 = vst [vmem:[#allocation9_spill] sm:$0xff] %v5049_v58  ;;  %4530 = vmatprep.subr.bf16.mxu1 %v5049_v58  ;;  %v4208_v27 = vsel %vm779_vm6, 1.0, %v6678_v1  ;;  %v4212_v28 = vsel %vm783_vm7, 1.0, %v6678_v1  ;;  %v4245_v29 = vsel %vm941_vm8, 1.0, %v6678_v1  ;;  %v4249_v30 = vsel %vm945_vm9, 1.0, %v6678_v1 }
  0x3a   : > { %v887_v31 = vadd.f32 %v4208_v27, %v725_v54  ;;  %v891_v34 = vadd.f32 %v4212_v28, %v729_v55  ;;  %vm1103_vm10 = vcmp.eq.s32.totalorder %v4777_v2, %v5057_v26  ;;  %vm1107_vm11 = vcmp.eq.s32.totalorder %v4789_v5, %v5057_v26 }
  0x3b   : > { %v4282_v35 = vsel %vm1103_vm10, 1.0, %v6678_v1  ;;  %v4286_v36 = vsel %vm1107_vm11, 1.0, %v6678_v1  ;;  %v5080_v37 = vrot.slane %v4881_v32, %v4792_v6  ;;  %v5084_v38 = vrot.slane %v4884_v33, %v4792_v6 }
  0x3c   : > { %v1049_v39 = vadd.f32 %v4245_v29, %v887_v31  ;;  %v1053_v44 = vadd.f32 %v4249_v30, %v891_v34  ;;  %v5088_v51 = vrot.slane %v4815_v12, %v4795_v7  ;;  %v5092_v52 = vrot.slane %v4818_v13, %v4795_v7 }
  0x3d   : > { %vm1265_vm12 = vcmp.eq.s32.totalorder %v4777_v2, %v5080_v37  ;;  %vm1269_vm13 = vcmp.eq.s32.totalorder %v4789_v5, %v5080_v37  ;;  %vm1427_vm14 = vcmp.eq.s32.totalorder %v4777_v2, %v5084_v38  ;;  %vm1431_vm15 = vcmp.eq.s32.totalorder %v4789_v5, %v5084_v38 }
  0x3e   : > { %v1211_v53 = vadd.f32 %v4282_v35, %v1049_v39  ;;  %v1215_v54 = vadd.f32 %v4286_v36, %v1053_v44  ;;  %v4319_v12 = vsel %vm1265_vm12, 1.0, %v6678_v1  ;;  %v4323_v55 = vsel %vm1269_vm13, 1.0, %v6678_v1 }
  0x3f   : > { %v4356_v13 = vsel %vm1427_vm14, 1.0, %v6678_v1  ;;  %v4360_v27 = vsel %vm1431_vm15, 1.0, %v6678_v1  ;;  %vm295_vm0 = vcmp.eq.s32.totalorder %v4777_v2, %v5088_v51  ;;  %vm299_vm1 = vcmp.eq.s32.totalorder %v4789_v5, %v5088_v51 }
  0x40   : > { %v1373_v28 = vadd.f32 %v4319_v12, %v1211_v53  ;;  %v1377_v29 = vadd.f32 %v4323_v55, %v1215_v54  ;;  %v4099_v30 = vsel %vm295_vm0, 1.0, %v6678_v1  ;;  %v4103_v31 = vsel %vm299_vm1, 1.0, %v6678_v1 }
  0x41   : > { %vm457_vm2 = vcmp.eq.s32.totalorder %v4777_v2, %v5092_v52  ;;  %vm461_vm3 = vcmp.eq.s32.totalorder %v4789_v5, %v5092_v52  ;;  %v5118_v34 = vrot.slane %v4829_v16, %v4795_v7  ;;  %v5122_v35 = vrot.slane %v4832_v17, %v4795_v7 }
  0x42   : > { %v1535_v36 = vadd.f32 %v4356_v13, %v1373_v28  ;;  %v1539_v39 = vadd.f32 %v4360_v27, %v1377_v29  ;;  %v4136_v44 = vsel %vm457_vm2, 1.0, %v6678_v1  ;;  %v4140_v53 = vsel %vm461_vm3, 1.0, %v6678_v1 }
  0x43   : > { %v565_v54 = vadd.f32 %v4136_v44, %v4099_v30  ;;  %v569_v12 = vadd.f32 %v4140_v53, %v4103_v31  ;;  %vm619_vm4 = vcmp.eq.s32.totalorder %v4777_v2, %v5118_v34  ;;  %vm623_vm5 = vcmp.eq.s32.totalorder %v4789_v5, %v5118_v34 }
  0x44   : > { %v1619_v16 = vand.u32 4294901760, %v1535_v36  ;;  %v1623_v55 = vand.u32 4294901760, %v1539_v39  ;;  %v4173_v6 = vsel %vm619_vm4, 1.0, %v6678_v1  ;;  %v4177_v17 = vsel %vm623_vm5, 1.0, %v6678_v1 }
  0x45   : > { %v727_v13 = vadd.f32 %v4173_v6, %v565_v54  ;;  %v731_v27 = vadd.f32 %v4177_v17, %v569_v12  ;;  %vm781_vm6 = vcmp.eq.s32.totalorder %v4777_v2, %v5122_v35  ;;  %vm785_vm7 = vcmp.eq.s32.totalorder %v4789_v5, %v5122_v35 }
  0x46   : > { %v5136_v28 = vpack.c.bf16 %v1623_v55, %v1619_v16  ;;  %v5138_v29 = vsub.f32 %v1535_v36, %v1619_v16  ;;  %v5140_v30 = vsub.f32 %v1539_v39, %v1623_v55  ;;  %v4210_v31 = vsel %vm781_vm6, 1.0, %v6678_v1 }
  0x47   : > { %v4214_v44 = vsel %vm785_vm7, 1.0, %v6678_v1  ;;  %v889_v53 = vadd.f32 %v4210_v31, %v727_v13  ;;  %v5146_v6 = vrot.slane %v4867_v24, %v4795_v7  ;;  %v5150_v54 = vrot.slane %v4870_v25, %v4795_v7 }
  0x48   : > { %6726 = vst [vmem:[#allocation10_spill] sm:$0xff] %v5136_v28  ;;  %4436 = vmatpush1.bf16.msra.mxu0 %v5136_v28  ;;  %v893_v12 = vadd.f32 %v4214_v44, %v731_v27  ;;  %v5155_v36 = vrot.slane %v4881_v32, %v4795_v7  ;;  %v5159_v39 = vrot.slane %v4884_v33, %v4795_v7 }
  0x49   : > { %vm302_vm8 = vcmp.eq.s32.totalorder %v4803_v8, %v4822_v14  ;;  %vm943_vm9 = vcmp.eq.s32.totalorder %v4777_v2, %v5146_v6  ;;  %vm947_vm10 = vcmp.eq.s32.totalorder %v4789_v5, %v5146_v6  ;;  %vm1105_vm11 = vcmp.eq.s32.totalorder %v4777_v2, %v5150_v54 }
  0x4a   : > { %vm1109_vm12 = vcmp.eq.s32.totalorder %v4789_v5, %v5150_v54  ;;  %v4247_v24 = vsel %vm943_vm9, 1.0, %v6678_v1  ;;  %v4251_v25 = vsel %vm947_vm10, 1.0, %v6678_v1  ;;  %v4284_v32 = vsel %vm1105_vm11, 1.0, %v6678_v1 }
  0x4b   : > { %v4288_v33 = vsel %vm1109_vm12, 1.0, %v6678_v1  ;;  %v1051_v16 = vadd.f32 %v4247_v24, %v889_v53  ;;  %v1055_v55 = vadd.f32 %v4251_v25, %v893_v12  ;;  %vm1267_vm13 = vcmp.eq.s32.totalorder %v4777_v2, %v5155_v36 }
  0x4c   : > { %vm1271_vm14 = vcmp.eq.s32.totalorder %v4789_v5, %v5155_v36  ;;  %v4321_v17 = vsel %vm1267_vm13, 1.0, %v6678_v1  ;;  %vm1429_vm15 = vcmp.eq.s32.totalorder %v4777_v2, %v5159_v39  ;;  %vm1433_vm0 = vcmp.eq.s32.totalorder %v4789_v5, %v5159_v39 }
  0x4d   : > { %v4325_v13 = vsel %vm1271_vm14, 1.0, %v6678_v1  ;;  %v1213_v27 = vadd.f32 %v4284_v32, %v1051_v16  ;;  %v1217_v31 = vadd.f32 %v4288_v33, %v1055_v55  ;;  %v4358_v44 = vsel %vm1429_vm15, 1.0, %v6678_v1 }
  0x4e   : > { %v4362_v53 = vsel %vm1433_vm0, 1.0, %v6678_v1  ;;  %vm306_vm1 = vcmp.eq.s32.totalorder %v4806_v9, %v4822_v14  ;;  %v4106_v12 = vsel %vm302_vm8, 1.0, %v6678_v1  ;;  %vm464_vm2 = vcmp.eq.s32.totalorder %v4803_v8, %v4826_v15 }
  0x4f   : > { %vm468_vm3 = vcmp.eq.s32.totalorder %v4806_v9, %v4826_v15  ;;  %v1375_v24 = vadd.f32 %v4321_v17, %v1213_v27  ;;  %v1379_v25 = vadd.f32 %v4325_v13, %v1217_v31  ;;  %v4110_v32 = vsel %vm306_vm1, 1.0, %v6678_v1 }
  0x50   : > { %v4143_v33 = vsel %vm464_vm2, 1.0, %v6678_v1  ;;  %v4147_v16 = vsel %vm468_vm3, 1.0, %v6678_v1  ;;  %vm626_vm4 = vcmp.eq.s32.totalorder %v4803_v8, %v4844_v20  ;;  %vm630_vm5 = vcmp.eq.s32.totalorder %v4806_v9, %v4844_v20 }
  0x51   : > { %v572_v55 = vadd.f32 %v4143_v33, %v4106_v12  ;;  %v1537_v5 = vadd.f32 %v4358_v44, %v1375_v24  ;;  %v1541_v7 = vadd.f32 %v4362_v53, %v1379_v25  ;;  %v576_v4 = vadd.f32 %v4147_v16, %v4110_v32 }
  0x52   : > { %v4180_v3 = vsel %vm626_vm4, 1.0, %v6678_v1  ;;  %v4184_v17 = vsel %vm630_vm5, 1.0, %v6678_v1  ;;  %vm788_vm6 = vcmp.eq.s32.totalorder %v4803_v8, %v4848_v21  ;;  %vm792_vm7 = vcmp.eq.s32.totalorder %v4806_v9, %v4848_v21 }
  0x53   : > { %v734_v13 = vadd.f32 %v4180_v3, %v572_v55  ;;  %v2292_v27 = vand.u32 4294901760, %v1537_v5  ;;  %v2296_v31 = vand.u32 4294901760, %v1541_v7  ;;  %v738_v12 = vadd.f32 %v4184_v17, %v576_v4 }
  0x54   : > { %v4217_v33 = vsel %vm788_vm6, 1.0, %v6678_v1  ;;  %v4221_v44 = vsel %vm792_vm7, 1.0, %v6678_v1  ;;  %vm950_vm8 = vcmp.eq.s32.totalorder %v4803_v8, %v4896_v40  ;;  %vm954_vm9 = vcmp.eq.s32.totalorder %v4806_v9, %v4896_v40 }
  0x55   : > { %v896_v53 = vadd.f32 %v4217_v33, %v734_v13  ;;  %v5216_v3 = vpack.c.bf16 %v2296_v31, %v2292_v27  ;;  %v5218_v24 = vsub.f32 %v1537_v5, %v2292_v27  ;;  %v5220_v25 = vsub.f32 %v1541_v7, %v2296_v31 }
  0x56   : > { %v900_v32 = vadd.f32 %v4221_v44, %v738_v12  ;;  %v4254_v4 = vsel %vm950_vm8, 1.0, %v6678_v1  ;;  %v4258_v16 = vsel %vm954_vm9, 1.0, %v6678_v1  ;;  %vm1112_vm10 = vcmp.eq.s32.totalorder %v4803_v8, %v4900_v41 }
  0x57   : > { %6727 = vst [vmem:[#allocation11_spill] sm:$0xff] %v5216_v3  ;;  %vm1116_vm11 = vcmp.eq.s32.totalorder %v4806_v9, %v4900_v41  ;;  %4532 = vmatpush1.bf16.msra.mxu1 %v5216_v3  ;;  %v1058_v55 = vadd.f32 %v4254_v4, %v896_v53  ;;  %v4291_v5 = vsel %vm1112_vm10, 1.0, %v6678_v1  ;;  %vm1274_vm12 = vcmp.eq.s32.totalorder %v4803_v8, %v4904_v42 }
  0x58   : > { %v1062_v17 = vadd.f32 %v4258_v16, %v900_v32  ;;  %v4295_v7 = vsel %vm1116_vm11, 1.0, %v6678_v1  ;;  %vm1278_vm13 = vcmp.eq.s32.totalorder %v4806_v9, %v4904_v42  ;;  %vm1436_vm14 = vcmp.eq.s32.totalorder %v4803_v8, %v4908_v43 }
  0x59   : > { %vm1440_vm15 = vcmp.eq.s32.totalorder %v4806_v9, %v4908_v43  ;;  %v1220_v13 = vadd.f32 %v4291_v5, %v1058_v55  ;;  %v4328_v31 = vsel %vm1274_vm12, 1.0, %v6678_v1  ;;  %v4332_v12 = vsel %vm1278_vm13, 1.0, %v6678_v1 }
  0x5a   : > { %v1224_v27 = vadd.f32 %v4295_v7, %v1062_v17  ;;  %v4365_v33 = vsel %vm1436_vm14, 1.0, %v6678_v1  ;;  %v4369_v44 = vsel %vm1440_vm15, 1.0, %v6678_v1  ;;  %vm304_vm0 = vcmp.eq.s32.totalorder %v4803_v8, %v4836_v18 }
  0x5b   : > { %vm308_vm1 = vcmp.eq.s32.totalorder %v4806_v9, %v4836_v18  ;;  %v1382_v53 = vadd.f32 %v4328_v31, %v1220_v13  ;;  %v4108_v4 = vsel %vm304_vm0, 1.0, %v6678_v1  ;;  %vm466_vm2 = vcmp.eq.s32.totalorder %v4803_v8, %v4840_v19 }
  0x5c   : > { %v1386_v32 = vadd.f32 %v4332_v12, %v1224_v27  ;;  %v4112_v16 = vsel %vm308_vm1, 1.0, %v6678_v1  ;;  %vm470_vm3 = vcmp.eq.s32.totalorder %v4806_v9, %v4840_v19  ;;  %vm628_vm4 = vcmp.eq.s32.totalorder %v4803_v8, %v4852_v22 }
  0x5d   : > { %vm632_vm5 = vcmp.eq.s32.totalorder %v4806_v9, %v4852_v22  ;;  %v1544_v55 = vadd.f32 %v4365_v33, %v1382_v53  ;;  %v4145_v5 = vsel %vm466_vm2, 1.0, %v6678_v1  ;;  %v4149_v7 = vsel %vm470_vm3, 1.0, %v6678_v1 }
  0x5e   : > { %v1548_v17 = vadd.f32 %v4369_v44, %v1386_v32  ;;  %v574_v13 = vadd.f32 %v4145_v5, %v4108_v4  ;;  %v578_v27 = vadd.f32 %v4149_v7, %v4112_v16  ;;  %v4182_v31 = vsel %vm628_vm4, 1.0, %v6678_v1 }
  0x5f   : > { %v4186_v12 = vsel %vm632_vm5, 1.0, %v6678_v1  ;;  %v1625_v3 = vand.u32 4294901760, %v1544_v55  ;;  %vm790_vm6 = vcmp.eq.s32.totalorder %v4803_v8, %v4856_v23  ;;  %vm794_vm7 = vcmp.eq.s32.totalorder %v4806_v9, %v4856_v23 }
  0x60   : > { %v1629_v28 = vand.u32 4294901760, %v1548_v17  ;;  %v736_v33 = vadd.f32 %v4182_v31, %v574_v13  ;;  %v740_v44 = vadd.f32 %v4186_v12, %v578_v27  ;;  %v4219_v53 = vsel %vm790_vm6, 1.0, %v6678_v1 }
  0x61   : > { %v4223_v32 = vsel %vm794_vm7, 1.0, %v6678_v1  ;;  %v5269_v16 = vsub.f32 %v1544_v55, %v1625_v3  ;;  %vm952_vm8 = vcmp.eq.s32.totalorder %v4803_v8, %v4966_v45  ;;  %vm956_vm9 = vcmp.eq.s32.totalorder %v4806_v9, %v4966_v45 }
  0x62   : > { %v5267_v4 = vpack.c.bf16 %v1629_v28, %v1625_v3  ;;  %v5271_v5 = vsub.f32 %v1548_v17, %v1629_v28  ;;  %v898_v7 = vadd.f32 %v4219_v53, %v736_v33  ;;  %v902_v58 = vadd.f32 %v4223_v32, %v740_v44 }
  0x63   : > { %6729 = vst [vmem:[#allocation13_spill] sm:$0xff] %v5269_v16  ;;  %v4256_v13 = vsel %vm952_vm8, 1.0, %v6678_v1  ;;  %v4260_v27 = vsel %vm956_vm9, 1.0, %v6678_v1  ;;  %vm1114_vm10 = vcmp.eq.s32.totalorder %v4803_v8, %v4970_v46  ;;  %vm1118_vm11 = vcmp.eq.s32.totalorder %v4806_v9, %v4970_v46 }
  0x64   : > { %6728 = vst [vmem:[#allocation12_spill] sm:$0xff] %v5267_v4  ;;  %6730 = vst [vmem:[#allocation14_spill] sm:$0xff] %v5271_v5  ;;  %4438 = vmatprep.subr.bf16.mxu0 %v5267_v4  ;;  %vm1276_vm12 = vcmp.eq.s32.totalorder %v4803_v8, %v4980_v50  ;;  %v1060_v28 = vadd.f32 %v4256_v13, %v898_v7  ;;  %v1064_v3 = vadd.f32 %v4260_v27, %v902_v58 }
  0x65   : > { %v4293_v55 = vsel %vm1114_vm10, 1.0, %v6678_v1  ;;  %v4297_v17 = vsel %vm1118_vm11, 1.0, %v6678_v1  ;;  %vm1280_vm13 = vcmp.eq.s32.totalorder %v4806_v9, %v4980_v50  ;;  %v4330_v31 = vsel %vm1276_vm12, 1.0, %v6678_v1 }
  0x66   : > { %vm1438_vm14 = vcmp.eq.s32.totalorder %v4803_v8, %v5003_v59  ;;  %vm1442_vm15 = vcmp.eq.s32.totalorder %v4806_v9, %v5003_v59  ;;  %v1222_v12 = vadd.f32 %v4293_v55, %v1060_v28  ;;  %v1226_v33 = vadd.f32 %v4297_v17, %v1064_v3 }
  0x67   : > { %v4334_v44 = vsel %vm1280_vm13, 1.0, %v6678_v1  ;;  %v4367_v58 = vsel %vm1438_vm14, 1.0, %v6678_v1  ;;  %v4371_v53 = vsel %vm1442_vm15, 1.0, %v6678_v1  ;;  %vm301_vm0 = vcmp.eq.s32.totalorder %v4803_v8, %v5007_v60 }
  0x68   : > { %vm305_vm1 = vcmp.eq.s32.totalorder %v4806_v9, %v5007_v60  ;;  %vm463_vm2 = vcmp.eq.s32.totalorder %v4803_v8, %v5011_v63  ;;  %v1384_v32 = vadd.f32 %v4330_v31, %v1222_v12  ;;  %v1388_v7 = vadd.f32 %v4334_v44, %v1226_v33 }
  0x69   : > { %v4105_v13 = vsel %vm301_vm0, 1.0, %v6678_v1  ;;  %v4109_v27 = vsel %vm305_vm1, 1.0, %v6678_v1  ;;  %vm467_vm3 = vcmp.eq.s32.totalorder %v4806_v9, %v5011_v63  ;;  %v4142_v28 = vsel %vm463_vm2, 1.0, %v6678_v1 }
  0x6a   : > { %vm625_vm4 = vcmp.eq.s32.totalorder %v4803_v8, %v5015_v0  ;;  %vm629_vm5 = vcmp.eq.s32.totalorder %v4806_v9, %v5015_v0  ;;  %v1546_v3 = vadd.f32 %v4367_v58, %v1384_v32  ;;  %v1550_v55 = vadd.f32 %v4371_v53, %v1388_v7 }
  0x6b   : > { %v4146_v17 = vsel %vm467_vm3, 1.0, %v6678_v1  ;;  %v571_v31 = vadd.f32 %v4142_v28, %v4105_v13  ;;  %v4179_v33 = vsel %vm625_vm4, 1.0, %v6678_v1  ;;  %v4183_v44 = vsel %vm629_vm5, 1.0, %v6678_v1 }
  0x6c   : > { %v575_v12 = vadd.f32 %v4146_v17, %v4109_v27  ;;  %vm787_vm6 = vcmp.eq.s32.totalorder %v4803_v8, %v5043_v56  ;;  %v2298_v4 = vand.u32 4294901760, %v1546_v3  ;;  %v2302_v47 = vand.u32 4294901760, %v1550_v55 }
  0x6d   : > { %v733_v5 = vadd.f32 %v4179_v33, %v571_v31  ;;  %vm791_vm7 = vcmp.eq.s32.totalorder %v4806_v9, %v5043_v56  ;;  %v4216_v58 = vsel %vm787_vm6, 1.0, %v6678_v1  ;;  %vm949_vm8 = vcmp.eq.s32.totalorder %v4803_v8, %v5047_v57 }
  0x6e   : > { %v737_v16 = vadd.f32 %v4183_v44, %v575_v12  ;;  %v4220_v53 = vsel %vm791_vm7, 1.0, %v6678_v1  ;;  %v5324_v32 = vpack.c.bf16 %v2302_v47, %v2298_v4  ;;  %v5326_v7 = vsub.f32 %v1546_v3, %v2298_v4 }
  0x6f   : > { %v5328_v13 = vsub.f32 %v1550_v55, %v2302_v47  ;;  %v895_v27 = vadd.f32 %v4216_v58, %v733_v5  ;;  %vm953_vm9 = vcmp.eq.s32.totalorder %v4806_v9, %v5047_v57  ;;  %v4253_v17 = vsel %vm949_vm8, 1.0, %v6678_v1 }
  0x70   : > { %6731 = vst [vmem:[#allocation15_spill] sm:$0xff] %v5324_v32  ;;  %v899_v28 = vadd.f32 %v4220_v53, %v737_v16  ;;  %vm1111_vm10 = vcmp.eq.s32.totalorder %v4803_v8, %v5057_v26  ;;  %4534 = vmatprep.subr.bf16.mxu1 %v5324_v32  ;;  %v4257_v31 = vsel %vm953_vm9, 1.0, %v6678_v1  ;;  %vm1115_vm11 = vcmp.eq.s32.totalorder %v4806_v9, %v5057_v26 }
  0x71   : > { %6732 = vst [vmem:[#allocation16_spill] sm:$0xff] %v5328_v13  ;;  %v1057_v12 = vadd.f32 %v4253_v17, %v895_v27  ;;  %v4290_v47 = vsel %vm1111_vm10, 1.0, %v6678_v1  ;;  %v4294_v16 = vsel %vm1115_vm11, 1.0, %v6678_v1  ;;  %vm1273_vm12 = vcmp.eq.s32.totalorder %v4803_v8, %v5080_v37 }
  0x72   : > { %v1061_v4 = vadd.f32 %v4257_v31, %v899_v28  ;;  %vm1277_vm13 = vcmp.eq.s32.totalorder %v4806_v9, %v5080_v37  ;;  %v4327_v3 = vsel %vm1273_vm12, 1.0, %v6678_v1  ;;  %vm1435_vm14 = vcmp.eq.s32.totalorder %v4803_v8, %v5084_v38 }
  0x73   : > { %v1219_v5 = vadd.f32 %v4290_v47, %v1057_v12  ;;  %v4331_v55 = vsel %vm1277_vm13, 1.0, %v6678_v1  ;;  %vm1439_vm15 = vcmp.eq.s32.totalorder %v4806_v9, %v5084_v38  ;;  %v4364_v44 = vsel %vm1435_vm14, 1.0, %v6678_v1 }
  0x74   : > { %v1223_v33 = vadd.f32 %v4294_v16, %v1061_v4  ;;  %vm303_vm0 = vcmp.eq.s32.totalorder %v4803_v8, %v5088_v51  ;;  %v4368_v53 = vsel %vm1439_vm15, 1.0, %v6678_v1  ;;  %vm307_vm1 = vcmp.eq.s32.totalorder %v4806_v9, %v5088_v51 }
  0x75   : > { %v1381_v58 = vadd.f32 %v4327_v3, %v1219_v5  ;;  %v4107_v27 = vsel %vm303_vm0, 1.0, %v6678_v1  ;;  %v4111_v17 = vsel %vm307_vm1, 1.0, %v6678_v1  ;;  %vm465_vm2 = vcmp.eq.s32.totalorder %v4803_v8, %v5092_v52 }
  0x76   : > { %v1385_v28 = vadd.f32 %v4331_v55, %v1223_v33  ;;  %vm469_vm3 = vcmp.eq.s32.totalorder %v4806_v9, %v5092_v52  ;;  %v4144_v12 = vsel %vm465_vm2, 1.0, %v6678_v1  ;;  %vm627_vm4 = vcmp.eq.s32.totalorder %v4803_v8, %v5118_v34 }
  0x77   : > { %v1543_v31 = vadd.f32 %v4364_v44, %v1381_v58  ;;  %v4148_v47 = vsel %vm469_vm3, 1.0, %v6678_v1  ;;  %v573_v16 = vadd.f32 %v4144_v12, %v4107_v27  ;;  %vm631_vm5 = vcmp.eq.s32.totalorder %v4806_v9, %v5118_v34 }
  0x78   : > { %v1547_v4 = vadd.f32 %v4368_v53, %v1385_v28  ;;  %v577_v5 = vadd.f32 %v4148_v47, %v4111_v17  ;;  %v4181_v55 = vsel %vm627_vm4, 1.0, %v6678_v1  ;;  %v4185_v33 = vsel %vm631_vm5, 1.0, %v6678_v1 }
  0x79   : > { %v1627_v3 = vand.u32 4294901760, %v1543_v31  ;;  %vm789_vm6 = vcmp.eq.s32.totalorder %v4803_v8, %v5122_v35  ;;  %v735_v58 = vadd.f32 %v4181_v55, %v573_v16  ;;  %vm793_vm7 = vcmp.eq.s32.totalorder %v4806_v9, %v5122_v35 }
  0x7a   : > { %v1631_v44 = vand.u32 4294901760, %v1547_v4  ;;  %v739_v32 = vadd.f32 %v4185_v33, %v577_v5  ;;  %v4218_v27 = vsel %vm789_vm6, 1.0, %v6678_v1  ;;  %v4222_v28 = vsel %vm793_vm7, 1.0, %v6678_v1 }
  0x7b   : > { %v5375_v53 = vsub.f32 %v1543_v31, %v1627_v3  ;;  %vm951_vm8 = vcmp.eq.s32.totalorder %v4803_v8, %v5146_v6  ;;  %v897_v47 = vadd.f32 %v4218_v27, %v735_v58  ;;  %vm955_vm9 = vcmp.eq.s32.totalorder %v4806_v9, %v5146_v6 }
  0x7c   : > { %v5381_v17 = vpack.c.bf16 %v1631_v44, %v1627_v3  ;;  %v5383_v12 = vsub.f32 %v1547_v4, %v1631_v44  ;;  %v901_v13 = vadd.f32 %v4222_v28, %v739_v32  ;;  %v4255_v16 = vsel %vm951_vm8, 1.0, %v6678_v1 }
  0x7d   : > { %vm1113_vm10 = vcmp.eq.s32.totalorder %v4803_v8, %v5150_v54  ;;  %vm1117_vm11 = vcmp.eq.s32.totalorder %v4806_v9, %v5150_v54  ;;  %v4259_v31 = vsel %vm955_vm9, 1.0, %v6678_v1  ;;  %v1059_v5 = vadd.f32 %v4255_v16, %v897_v47 }
  0x7e   : > { %6733 = vst [vmem:[#allocation17_spill] sm:$0xff] %v5381_v17  ;;  %6734 = vst [vmem:[#allocation18_spill] sm:$0xff] %v5383_v12  ;;  %4440 = vmatpush1.bf16.msra.mxu0 %v5381_v17  ;;  %v4292_v4 = vsel %vm1113_vm10, 1.0, %v6678_v1  ;;  %v4296_v32 = vsel %vm1117_vm11, 1.0, %v6678_v1  ;;  %v1063_v3 = vadd.f32 %v4259_v31, %v901_v13  ;;  %vm1275_vm12 = vcmp.eq.s32.totalorder %v4803_v8, %v5155_v36 }
  0x7f   : > { %vm1279_vm13 = vcmp.eq.s32.totalorder %v4806_v9, %v5155_v36  ;;  %vm1437_vm14 = vcmp.eq.s32.totalorder %v4803_v8, %v5159_v39  ;;  %v1221_v55 = vadd.f32 %v4292_v4, %v1059_v5  ;;  %v4329_v33 = vsel %vm1275_vm12, 1.0, %v6678_v1 }
  0x80   : > { %v4333_v44 = vsel %vm1279_vm13, 1.0, %v6678_v1  ;;  %vm1441_vm15 = vcmp.eq.s32.totalorder %v4806_v9, %v5159_v39  ;;  %v1225_v58 = vadd.f32 %v4296_v32, %v1063_v3  ;;  %v4366_v13 = vsel %vm1437_vm14, 1.0, %v6678_v1 }
  0x81   : > { %v4370_v27 = vsel %vm1441_vm15, 1.0, %v6678_v1  ;;  %vm310_vm0 = vcmp.eq.s32.totalorder %v4809_v10, %v4822_v14  ;;  %v1383_v28 = vadd.f32 %v4329_v33, %v1221_v55  ;;  %vm314_vm1 = vcmp.eq.s32.totalorder %v4812_v11, %v4822_v14 }
  0x82   : > { %v4114_v8 = vsel %vm310_vm0, 1.0, %v6678_v1  ;;  %vm472_vm2 = vcmp.eq.s32.totalorder %v4809_v10, %v4826_v15  ;;  %v1387_v47 = vadd.f32 %v4333_v44, %v1225_v58  ;;  %v4118_v9 = vsel %vm314_vm1, 1.0, %v6678_v1 }
  0x83   : > { %vm476_vm3 = vcmp.eq.s32.totalorder %v4812_v11, %v4826_v15  ;;  %v4151_v16 = vsel %vm472_vm2, 1.0, %v6678_v1  ;;  %v1545_v31 = vadd.f32 %v4366_v13, %v1383_v28  ;;  %vm634_vm4 = vcmp.eq.s32.totalorder %v4809_v10, %v4844_v20 }
  0x84   : > { %v4155_v5 = vsel %vm476_vm3, 1.0, %v6678_v1  ;;  %v580_v4 = vadd.f32 %v4151_v16, %v4114_v8  ;;  %v1549_v32 = vadd.f32 %v4370_v27, %v1387_v47  ;;  %vm638_vm5 = vcmp.eq.s32.totalorder %v4812_v11, %v4844_v20 }
  0x85   : > { %v584_v3 = vadd.f32 %v4155_v5, %v4118_v9  ;;  %v4188_v55 = vsel %vm634_vm4, 1.0, %v6678_v1  ;;  %v2300_v33 = vand.u32 4294901760, %v1545_v31  ;;  %v4192_v44 = vsel %vm638_vm5, 1.0, %v6678_v1 }
  0x86   : > { %v742_v58 = vadd.f32 %v4188_v55, %v580_v4  ;;  %vm796_vm6 = vcmp.eq.s32.totalorder %v4809_v10, %v4848_v21  ;;  %v2304_v13 = vand.u32 4294901760, %v1549_v32  ;;  %vm800_vm7 = vcmp.eq.s32.totalorder %v4812_v11, %v4848_v21 }
  0x87   : > { %v746_v28 = vadd.f32 %v4192_v44, %v584_v3  ;;  %v4225_v27 = vsel %vm796_vm6, 1.0, %v6678_v1  ;;  %v5431_v8 = vsub.f32 %v1545_v31, %v2300_v33  ;;  %v4229_v47 = vsel %vm800_vm7, 1.0, %v6678_v1 }
  0x88   : > { %v904_v9 = vadd.f32 %v4225_v27, %v742_v58  ;;  %vm958_vm8 = vcmp.eq.s32.totalorder %v4809_v10, %v4896_v40  ;;  %v5436_v16 = vpack.c.bf16 %v2304_v13, %v2300_v33  ;;  %v5438_v5 = vsub.f32 %v1549_v32, %v2304_v13 }
  0x89   : > { %6735 = vst [vmem:[#allocation19_spill] sm:$0xff] %v5431_v8  ;;  %v908_v4 = vadd.f32 %v4229_v47, %v746_v28  ;;  %vm962_vm9 = vcmp.eq.s32.totalorder %v4812_v11, %v4896_v40  ;;  %v4262_v3 = vsel %vm958_vm8, 1.0, %v6678_v1  ;;  %vm1120_vm10 = vcmp.eq.s32.totalorder %v4809_v10, %v4900_v41 }
  0x8a   : > { %6736 = vst [vmem:[#allocation20_spill] sm:$0xff] %v5436_v16  ;;  %6737 = vst [vmem:[#allocation21_spill] sm:$0xff] %v5438_v5  ;;  %v4266_v55 = vsel %vm962_vm9, 1.0, %v6678_v1  ;;  %vm1124_vm11 = vcmp.eq.s32.totalorder %v4812_v11, %v4900_v41  ;;  %4536 = vmatpush1.bf16.msra.mxu1 %v5436_v16  ;;  %v1066_v31 = vadd.f32 %v4262_v3, %v904_v9  ;;  %v4299_v32 = vsel %vm1120_vm10, 1.0, %v6678_v1 }
  0x8b   : > { %v1070_v33 = vadd.f32 %v4266_v55, %v908_v4  ;;  %v4303_v44 = vsel %vm1124_vm11, 1.0, %v6678_v1  ;;  %vm1282_vm12 = vcmp.eq.s32.totalorder %v4809_v10, %v4904_v42  ;;  %vm1286_vm13 = vcmp.eq.s32.totalorder %v4812_v11, %v4904_v42 }
  0x8c   : > { %vm1444_vm14 = vcmp.eq.s32.totalorder %v4809_v10, %v4908_v43  ;;  %vm1448_vm15 = vcmp.eq.s32.totalorder %v4812_v11, %v4908_v43  ;;  %v1228_v58 = vadd.f32 %v4299_v32, %v1066_v31  ;;  %v4336_v28 = vsel %vm1282_vm12, 1.0, %v6678_v1 }
  0x8d   : > { %v1232_v13 = vadd.f32 %v4303_v44, %v1070_v33  ;;  %v4340_v27 = vsel %vm1286_vm13, 1.0, %v6678_v1  ;;  %v4373_v47 = vsel %vm1444_vm14, 1.0, %v6678_v1  ;;  %v4377_v9 = vsel %vm1448_vm15, 1.0, %v6678_v1 }
  0x8e   : > { %vm312_vm0 = vcmp.eq.s32.totalorder %v4809_v10, %v4836_v18  ;;  %vm316_vm1 = vcmp.eq.s32.totalorder %v4812_v11, %v4836_v18  ;;  %v1390_v4 = vadd.f32 %v4336_v28, %v1228_v58  ;;  %vm474_vm2 = vcmp.eq.s32.totalorder %v4809_v10, %v4840_v19 }
  0x8f   : > { %v1394_v3 = vadd.f32 %v4340_v27, %v1232_v13  ;;  %v4116_v55 = vsel %vm312_vm0, 1.0, %v6678_v1  ;;  %v4120_v31 = vsel %vm316_vm1, 1.0, %v6678_v1  ;;  %vm478_vm3 = vcmp.eq.s32.totalorder %v4812_v11, %v4840_v19 }
  0x90   : > { %vm636_vm4 = vcmp.eq.s32.totalorder %v4809_v10, %v4852_v22  ;;  %vm640_vm5 = vcmp.eq.s32.totalorder %v4812_v11, %v4852_v22  ;;  %v1552_v33 = vadd.f32 %v4373_v47, %v1390_v4  ;;  %v4153_v44 = vsel %vm474_vm2, 1.0, %v6678_v1 }
  0x91   : > { %v1556_v32 = vadd.f32 %v4377_v9, %v1394_v3  ;;  %v4157_v58 = vsel %vm478_vm3, 1.0, %v6678_v1  ;;  %v582_v13 = vadd.f32 %v4153_v44, %v4116_v55  ;;  %v4190_v27 = vsel %vm636_vm4, 1.0, %v6678_v1 }
  0x92   : > { %v586_v28 = vadd.f32 %v4157_v58, %v4120_v31  ;;  %v4194_v16 = vsel %vm640_vm5, 1.0, %v6678_v1  ;;  %v1633_v17 = vand.u32 4294901760, %v1552_v33  ;;  %vm798_vm6 = vcmp.eq.s32.totalorder %v4809_v10, %v4856_v23 }
  0x93   : > { %v1637_v5 = vand.u32 4294901760, %v1556_v32  ;;  %vm802_vm7 = vcmp.eq.s32.totalorder %v4812_v11, %v4856_v23  ;;  %v744_v47 = vadd.f32 %v4190_v27, %v582_v13  ;;  %v4227_v4 = vsel %vm798_vm6, 1.0, %v6678_v1 }
  0x94   : > { %v748_v9 = vadd.f32 %v4194_v16, %v586_v28  ;;  %v4231_v3 = vsel %vm802_vm7, 1.0, %v6678_v1  ;;  %v5489_v31 = vsub.f32 %v1552_v33, %v1633_v17  ;;  %vm960_vm8 = vcmp.eq.s32.totalorder %v4809_v10, %v4966_v45 }
  0x95   : > { %v5487_v55 = vpack.c.bf16 %v1637_v5, %v1633_v17  ;;  %v5491_v44 = vsub.f32 %v1556_v32, %v1637_v5  ;;  %v906_v58 = vadd.f32 %v4227_v4, %v744_v47  ;;  %vm964_vm9 = vcmp.eq.s32.totalorder %v4812_v11, %v4966_v45 }
  0x96   : > { %6739 = vst [vmem:[#allocation23_spill] sm:$0xff] %v5489_v31  ;;  %v910_v8 = vadd.f32 %v4231_v3, %v748_v9  ;;  %v4264_v16 = vsel %vm960_vm8, 1.0, %v6678_v1  ;;  %v4268_v13 = vsel %vm964_vm9, 1.0, %v6678_v1  ;;  %vm1122_vm10 = vcmp.eq.s32.totalorder %v4809_v10, %v4970_v46 }
  0x97   : > { %6738 = vst [vmem:[#allocation22_spill] sm:$0xff] %v5487_v55  ;;  %6740 = vst [vmem:[#allocation24_spill] sm:$0xff] %v5491_v44  ;;  %4442 = vmatprep.subr.bf16.mxu0 %v5487_v55  ;;  %vm1126_vm11 = vcmp.eq.s32.totalorder %v4812_v11, %v4970_v46  ;;  %vm1284_vm12 = vcmp.eq.s32.totalorder %v4809_v10, %v4980_v50  ;;  %v1068_v17 = vadd.f32 %v4264_v16, %v906_v58 }
  0x98   : > { %v1072_v5 = vadd.f32 %v4268_v13, %v910_v8  ;;  %v4301_v33 = vsel %vm1122_vm10, 1.0, %v6678_v1  ;;  %v4305_v32 = vsel %vm1126_vm11, 1.0, %v6678_v1  ;;  %vm1288_vm13 = vcmp.eq.s32.totalorder %v4812_v11, %v4980_v50 }
  0x99   : > { %v4338_v28 = vsel %vm1284_vm12, 1.0, %v6678_v1  ;;  %vm1446_vm14 = vcmp.eq.s32.totalorder %v4809_v10, %v5003_v59  ;;  %vm1450_vm15 = vcmp.eq.s32.totalorder %v4812_v11, %v5003_v59  ;;  %v1230_v27 = vadd.f32 %v4301_v33, %v1068_v17 }
  0x9a   : > { %v1234_v47 = vadd.f32 %v4305_v32, %v1072_v5  ;;  %v4342_v9 = vsel %vm1288_vm13, 1.0, %v6678_v1  ;;  %v4375_v8 = vsel %vm1446_vm14, 1.0, %v6678_v1  ;;  %v4379_v4 = vsel %vm1450_vm15, 1.0, %v6678_v1 }
  0x9b   : > { %vm309_vm0 = vcmp.eq.s32.totalorder %v4809_v10, %v5007_v60  ;;  %vm313_vm1 = vcmp.eq.s32.totalorder %v4812_v11, %v5007_v60  ;;  %vm471_vm2 = vcmp.eq.s32.totalorder %v4809_v10, %v5011_v63  ;;  %v1392_v3 = vadd.f32 %v4338_v28, %v1230_v27 }
  0x9c   : > { %v1396_v58 = vadd.f32 %v4342_v9, %v1234_v47  ;;  %v4113_v16 = vsel %vm309_vm0, 1.0, %v6678_v1  ;;  %v4117_v13 = vsel %vm313_vm1, 1.0, %v6678_v1  ;;  %vm475_vm3 = vcmp.eq.s32.totalorder %v4812_v11, %v5011_v63 }
  0x9d   : > { %v4150_v17 = vsel %vm471_vm2, 1.0, %v6678_v1  ;;  %vm633_vm4 = vcmp.eq.s32.totalorder %v4809_v10, %v5015_v0  ;;  %vm637_vm5 = vcmp.eq.s32.totalorder %v4812_v11, %v5015_v0  ;;  %v1554_v5 = vadd.f32 %v4375_v8, %v1392_v3 }
  0x9e   : > { %v1558_v33 = vadd.f32 %v4379_v4, %v1396_v58  ;;  %v4154_v32 = vsel %vm475_vm3, 1.0, %v6678_v1  ;;  %v579_v28 = vadd.f32 %v4150_v17, %v4113_v16  ;;  %v4187_v47 = vsel %vm633_vm4, 1.0, %v6678_v1 }
  0x9f   : > { %v583_v27 = vadd.f32 %v4154_v32, %v4117_v13  ;;  %v4191_v9 = vsel %vm637_vm5, 1.0, %v6678_v1  ;;  %vm795_vm6 = vcmp.eq.s32.totalorder %v4809_v10, %v5043_v56  ;;  %v2306_v55 = vand.u32 4294901760, %v1554_v5 }
  0xa0   : > { %v2310_v44 = vand.u32 4294901760, %v1558_v33  ;;  %v741_v31 = vadd.f32 %v4187_v47, %v579_v28  ;;  %vm799_vm7 = vcmp.eq.s32.totalorder %v4812_v11, %v5043_v56  ;;  %v4224_v8 = vsel %vm795_vm6, 1.0, %v6678_v1 }
  0xa1   : > { %v745_v12 = vadd.f32 %v4191_v9, %v583_v27  ;;  %v4228_v4 = vsel %vm799_vm7, 1.0, %v6678_v1  ;;  %vm957_vm8 = vcmp.eq.s32.totalorder %v4809_v10, %v5047_v57  ;;  %v5546_v58 = vsub.f32 %v1554_v5, %v2306_v55 }
  0xa2   : > { %v5544_v3 = vpack.c.bf16 %v2310_v44, %v2306_v55  ;;  %v5548_v16 = vsub.f32 %v1558_v33, %v2310_v44  ;;  %v903_v13 = vadd.f32 %v4224_v8, %v741_v31  ;;  %vm961_vm9 = vcmp.eq.s32.totalorder %v4812_v11, %v5047_v57 }
  0xa3   : > { %6742 = vst [vmem:[#allocation26_spill] sm:$0xff] %v5546_v58  ;;  %v907_v17 = vadd.f32 %v4228_v4, %v745_v12  ;;  %v4261_v32 = vsel %vm957_vm8, 1.0, %v6678_v1  ;;  %vm1119_vm10 = vcmp.eq.s32.totalorder %v4809_v10, %v5057_v26  ;;  %v4265_v28 = vsel %vm961_vm9, 1.0, %v6678_v1 }
  0xa4   : > { %6741 = vst [vmem:[#allocation25_spill] sm:$0xff] %v5544_v3  ;;  %6743 = vst [vmem:[#allocation27_spill] sm:$0xff] %v5548_v16  ;;  %4538 = vmatprep.subr.bf16.mxu1 %v5544_v3  ;;  %v1065_v27 = vadd.f32 %v4261_v32, %v903_v13  ;;  %vm1123_vm11 = vcmp.eq.s32.totalorder %v4812_v11, %v5057_v26  ;;  %v4298_v55 = vsel %vm1119_vm10, 1.0, %v6678_v1 }
  0xa5   : > { %v1069_v31 = vadd.f32 %v4265_v28, %v907_v17  ;;  %v4302_v12 = vsel %vm1123_vm11, 1.0, %v6678_v1  ;;  %vm1281_vm12 = vcmp.eq.s32.totalorder %v4809_v10, %v5080_v37  ;;  %vm1285_vm13 = vcmp.eq.s32.totalorder %v4812_v11, %v5080_v37 }
  0xa6   : > { %v1227_v44 = vadd.f32 %v4298_v55, %v1065_v27  ;;  %v4335_v5 = vsel %vm1281_vm12, 1.0, %v6678_v1  ;;  %v4339_v33 = vsel %vm1285_vm13, 1.0, %v6678_v1  ;;  %vm1443_vm14 = vcmp.eq.s32.totalorder %v4809_v10, %v5084_v38 }
  0xa7   : > { %v1231_v47 = vadd.f32 %v4302_v12, %v1069_v31  ;;  %vm1447_vm15 = vcmp.eq.s32.totalorder %v4812_v11, %v5084_v38  ;;  %v4372_v9 = vsel %vm1443_vm14, 1.0, %v6678_v1  ;;  %vm311_vm0 = vcmp.eq.s32.totalorder %v4809_v10, %v5088_v51 }
  0xa8   : > { %v1389_v8 = vadd.f32 %v4335_v5, %v1227_v44  ;;  %v4376_v4 = vsel %vm1447_vm15, 1.0, %v6678_v1  ;;  %vm315_vm1 = vcmp.eq.s32.totalorder %v4812_v11, %v5088_v51  ;;  %v4115_v13 = vsel %vm311_vm0, 1.0, %v6678_v1 }
  0xa9   : > { %v1393_v17 = vadd.f32 %v4339_v33, %v1231_v47  ;;  %v4119_v32 = vsel %vm315_vm1, 1.0, %v6678_v1  ;;  %vm473_vm2 = vcmp.eq.s32.totalorder %v4809_v10, %v5092_v52  ;;  %vm477_vm3 = vcmp.eq.s32.totalorder %v4812_v11, %v5092_v52 }
  0xaa   : > { %v1551_v28 = vadd.f32 %v4372_v9, %v1389_v8  ;;  %v4152_v27 = vsel %vm473_vm2, 1.0, %v6678_v1  ;;  %v4156_v55 = vsel %vm477_vm3, 1.0, %v6678_v1  ;;  %vm635_vm4 = vcmp.eq.s32.totalorder %v4809_v10, %v5118_v34 }
  0xab   : > { %v1555_v31 = vadd.f32 %v4376_v4, %v1393_v17  ;;  %v581_v12 = vadd.f32 %v4152_v27, %v4115_v13  ;;  %v585_v44 = vadd.f32 %v4156_v55, %v4119_v32  ;;  %vm639_vm5 = vcmp.eq.s32.totalorder %v4812_v11, %v5118_v34 }
  0xac   : > { %v1635_v5 = vand.u32 4294901760, %v1551_v28  ;;  %v4189_v33 = vsel %vm635_vm4, 1.0, %v6678_v1  ;;  %v4193_v47 = vsel %vm639_vm5, 1.0, %v6678_v1  ;;  %vm797_vm6 = vcmp.eq.s32.totalorder %v4809_v10, %v5122_v35 }
  0xad   : > { %v1639_v9 = vand.u32 4294901760, %v1555_v31  ;;  %v743_v8 = vadd.f32 %v4189_v33, %v581_v12  ;;  %v747_v3 = vadd.f32 %v4193_v47, %v585_v44  ;;  %vm801_vm7 = vcmp.eq.s32.totalorder %v4812_v11, %v5122_v35 }
  0xae   : > { %v5595_v4 = vsub.f32 %v1551_v28, %v1635_v5  ;;  %v4226_v13 = vsel %vm797_vm6, 1.0, %v6678_v1  ;;  %v4230_v17 = vsel %vm801_vm7, 1.0, %v6678_v1  ;;  %vm959_vm8 = vcmp.eq.s32.totalorder %v4809_v10, %v5146_v6 }
  0xaf   : > { %v5601_v32 = vpack.c.bf16 %v1639_v9, %v1635_v5  ;;  %v5603_v27 = vsub.f32 %v1555_v31, %v1639_v9  ;;  %v905_v55 = vadd.f32 %v4226_v13, %v743_v8  ;;  %v909_v16 = vadd.f32 %v4230_v17, %v747_v3 }
  0xb0   : > { %6744 = vst [vmem:[#allocation28_spill] sm:$0xff] %v5595_v4  ;;  %vm963_vm9 = vcmp.eq.s32.totalorder %v4812_v11, %v5146_v6  ;;  %v4263_v12 = vsel %vm959_vm8, 1.0, %v6678_v1  ;;  %vm1121_vm10 = vcmp.eq.s32.totalorder %v4809_v10, %v5150_v54  ;;  %vm1125_vm11 = vcmp.eq.s32.totalorder %v4812_v11, %v5150_v54 }
  0xb1   : > { %6745 = vst [vmem:[#allocation29_spill] sm:$0xff] %v5601_v32  ;;  %6746 = vst [vmem:[#allocation30_spill] sm:$0xff] %v5603_v27  ;;  %4444 = vmatpush1.bf16.msra.mxu0 %v5601_v32  ;;  %v4267_v28 = vsel %vm963_vm9, 1.0, %v6678_v1  ;;  %v1067_v44 = vadd.f32 %v4263_v12, %v905_v55  ;;  %v4300_v31 = vsel %vm1121_vm10, 1.0, %v6678_v1  ;;  %v4304_v3 = vsel %vm1125_vm11, 1.0, %v6678_v1 }
  0xb2   : > { %v1071_v5 = vadd.f32 %v4267_v28, %v909_v16  ;;  %vm1283_vm12 = vcmp.eq.s32.totalorder %v4809_v10, %v5155_v36  ;;  %vm1287_vm13 = vcmp.eq.s32.totalorder %v4812_v11, %v5155_v36  ;;  %vm1445_vm14 = vcmp.eq.s32.totalorder %v4809_v10, %v5159_v39 }
  0xb3   : > { %v1229_v33 = vadd.f32 %v4300_v31, %v1067_v44  ;;  %v4337_v47 = vsel %vm1283_vm12, 1.0, %v6678_v1  ;;  %v4341_v9 = vsel %vm1287_vm13, 1.0, %v6678_v1  ;;  %vm1449_vm15 = vcmp.eq.s32.totalorder %v4812_v11, %v5159_v39 }
  0xb4   : > { %v1233_v8 = vadd.f32 %v4304_v3, %v1071_v5  ;;  %v4374_v16 = vsel %vm1445_vm14, 1.0, %v6678_v1  ;;  %v4378_v13 = vsel %vm1449_vm15, 1.0, %v6678_v1  ;;  %v5629_v17 = vadd.s32 48, %v4777_v2 }
  0xb5   : > { %v1391_v55 = vadd.f32 %v4337_v47, %v1229_v33  ;;  %v5632_v12 = vadd.s32 56, %v4777_v2  ;;  %v5635_v10 = vadd.s32 64, %v4777_v2 }
  0xb6   : > { %v1395_v44 = vadd.f32 %v4341_v9, %v1233_v8  ;;  %vm318_vm0 = vcmp.eq.s32.totalorder %v5629_v17, %v4822_v14  ;;  %vm480_vm1 = vcmp.eq.s32.totalorder %v5629_v17, %v4826_v15  ;;  %vm642_vm2 = vcmp.eq.s32.totalorder %v5629_v17, %v4844_v20 }
  0xb7   : > { %v1553_v11 = vadd.f32 %v4374_v16, %v1391_v55  ;;  %vm322_vm3 = vcmp.eq.s32.totalorder %v5632_v12, %v4822_v14  ;;  %v4122_v31 = vsel %vm318_vm0, 1.0, %v6678_v1  ;;  %vm484_vm4 = vcmp.eq.s32.totalorder %v5632_v12, %v4826_v15 }
  0xb8   : > { %v1557_v3 = vadd.f32 %v4378_v13, %v1395_v44  ;;  %v4126_v5 = vsel %vm322_vm3, 1.0, %v6678_v1  ;;  %v4159_v33 = vsel %vm480_vm1, 1.0, %v6678_v1  ;;  %v4163_v47 = vsel %vm484_vm4, 1.0, %v6678_v1 }
  0xb9   : > { %v2308_v9 = vand.u32 4294901760, %v1553_v11  ;;  %v588_v8 = vadd.f32 %v4159_v33, %v4122_v31  ;;  %v592_v28 = vadd.f32 %v4163_v47, %v4126_v5  ;;  %vm646_vm5 = vcmp.eq.s32.totalorder %v5632_v12, %v4844_v20 }
  0xba   : > { %v2312_v16 = vand.u32 4294901760, %v1557_v3  ;;  %v4196_v55 = vsel %vm642_vm2, 1.0, %v6678_v1  ;;  %v4200_v2 = vsel %vm646_vm5, 1.0, %v6678_v1  ;;  %vm804_vm6 = vcmp.eq.s32.totalorder %v5629_v17, %v4848_v21 }
  0xbb   : > { %v5658_v13 = vsub.f32 %v1553_v11, %v2308_v9  ;;  %v750_v44 = vadd.f32 %v4196_v55, %v588_v8  ;;  %v754_v32 = vadd.f32 %v4200_v2, %v592_v28  ;;  %vm808_vm7 = vcmp.eq.s32.totalorder %v5632_v12, %v4848_v21 }
  0xbc   : > { %v5662_v31 = vpack.c.bf16 %v2312_v16, %v2308_v9  ;;  %v5664_v5 = vsub.f32 %v1557_v3, %v2312_v16  ;;  %v4233_v33 = vsel %vm804_vm6, 1.0, %v6678_v1  ;;  %v4237_v47 = vsel %vm808_vm7, 1.0, %v6678_v1 }
  0xbd   : > { %6747 = vst [vmem:[#allocation31_spill] sm:$0xff] %v5658_v13  ;;  %v912_v27 = vadd.f32 %v4233_v33, %v750_v44  ;;  %v916_v4 = vadd.f32 %v4237_v47, %v754_v32  ;;  %vm966_vm8 = vcmp.eq.s32.totalorder %v5629_v17, %v4896_v40  ;;  %vm970_vm9 = vcmp.eq.s32.totalorder %v5632_v12, %v4896_v40 }
  0xbe   : > { %6748 = vst [vmem:[#allocation32_spill] sm:$0xff] %v5662_v31  ;;  %6749 = vst [vmem:[#allocation33_spill] sm:$0xff] %v5664_v5  ;;  %4540 = vmatpush1.bf16.msra.mxu1 %v5662_v31  ;;  %v4270_v2 = vsel %vm966_vm8, 1.0, %v6678_v1  ;;  %v4274_v28 = vsel %vm970_vm9, 1.0, %v6678_v1  ;;  %vm1128_vm10 = vcmp.eq.s32.totalorder %v5629_v17, %v4900_v41  ;;  %vm1132_vm11 = vcmp.eq.s32.totalorder %v5632_v12, %v4900_v41 }
  0xbf   : > { %v1074_v11 = vadd.f32 %v4270_v2, %v912_v27  ;;  %v1078_v32 = vadd.f32 %v4274_v28, %v916_v4  ;;  %v4307_v3 = vsel %vm1128_vm10, 1.0, %v6678_v1  ;;  %v4311_v9 = vsel %vm1132_vm11, 1.0, %v6678_v1 }
  0xc0   : > { %vm1290_vm12 = vcmp.eq.s32.totalorder %v5629_v17, %v4904_v42  ;;  %vm1294_vm13 = vcmp.eq.s32.totalorder %v5632_v12, %v4904_v42  ;;  %vm1452_vm14 = vcmp.eq.s32.totalorder %v5629_v17, %v4908_v43  ;;  %vm1456_vm15 = vcmp.eq.s32.totalorder %v5632_v12, %v4908_v43 }
  0xc1   : > { %v1236_v8 = vadd.f32 %v4307_v3, %v1074_v11  ;;  %v1240_v16 = vadd.f32 %v4311_v9, %v1078_v32  ;;  %v4344_v4 = vsel %vm1290_vm12, 1.0, %v6678_v1  ;;  %v4348_v27 = vsel %vm1294_vm13, 1.0, %v6678_v1 }
  0xc2   : > { %v4381_v55 = vsel %vm1452_vm14, 1.0, %v6678_v1  ;;  %v4385_v44 = vsel %vm1456_vm15, 1.0, %v6678_v1  ;;  %vm320_vm0 = vcmp.eq.s32.totalorder %v5629_v17, %v4836_v18  ;;  %vm324_vm1 = vcmp.eq.s32.totalorder %v5632_v12, %v4836_v18 }
  0xc3   : > { %v1398_v33 = vadd.f32 %v4344_v4, %v1236_v8  ;;  %v1402_v47 = vadd.f32 %v4348_v27, %v1240_v16  ;;  %v4124_v2 = vsel %vm320_vm0, 1.0, %v6678_v1  ;;  %v4128_v28 = vsel %vm324_vm1, 1.0, %v6678_v1 }
  0xc4   : > { %vm482_vm2 = vcmp.eq.s32.totalorder %v5629_v17, %v4840_v19  ;;  %vm486_vm3 = vcmp.eq.s32.totalorder %v5632_v12, %v4840_v19  ;;  %vm644_vm4 = vcmp.eq.s32.totalorder %v5629_v17, %v4852_v22  ;;  %vm648_vm5 = vcmp.eq.s32.totalorder %v5632_v12, %v4852_v22 }
  0xc5   : > { %v1560_v11 = vadd.f32 %v4381_v55, %v1398_v33  ;;  %v1564_v32 = vadd.f32 %v4385_v44, %v1402_v47  ;;  %v4161_v3 = vsel %vm482_vm2, 1.0, %v6678_v1  ;;  %v4165_v9 = vsel %vm486_vm3, 1.0, %v6678_v1 }
  0xc6   : > { %v590_v8 = vadd.f32 %v4161_v3, %v4124_v2  ;;  %v594_v16 = vadd.f32 %v4165_v9, %v4128_v28  ;;  %v4198_v4 = vsel %vm644_vm4, 1.0, %v6678_v1  ;;  %v4202_v27 = vsel %vm648_vm5, 1.0, %v6678_v1 }
  0xc7   : > { %v1641_v31 = vand.u32 4294901760, %v1560_v11  ;;  %v1645_v5 = vand.u32 4294901760, %v1564_v32  ;;  %vm806_vm6 = vcmp.eq.s32.totalorder %v5629_v17, %v4856_v23  ;;  %vm810_vm7 = vcmp.eq.s32.totalorder %v5632_v12, %v4856_v23 }
  0xc8   : > { %v752_v55 = vadd.f32 %v4198_v4, %v590_v8  ;;  %v756_v44 = vadd.f32 %v4202_v27, %v594_v16  ;;  %v4235_v33 = vsel %vm806_vm6, 1.0, %v6678_v1  ;;  %v4239_v47 = vsel %vm810_vm7, 1.0, %v6678_v1 }
  0xc9   : > { %v5717_v2 = vpack.c.bf16 %v1645_v5, %v1641_v31  ;;  %v5719_v28 = vsub.f32 %v1560_v11, %v1641_v31  ;;  %v5721_v3 = vsub.f32 %v1564_v32, %v1645_v5  ;;  %vm968_vm8 = vcmp.eq.s32.totalorder %v5629_v17, %v4966_v45 }
  0xca   : > { %v914_v9 = vadd.f32 %v4235_v33, %v752_v55  ;;  %v918_v13 = vadd.f32 %v4239_v47, %v756_v44  ;;  %vm972_vm9 = vcmp.eq.s32.totalorder %v5632_v12, %v4966_v45  ;;  %v4272_v8 = vsel %vm968_vm8, 1.0, %v6678_v1 }
  0xcb   : > { %6750 = vst [vmem:[#allocation34_spill] sm:$0xff] %v5717_v2  ;;  %6751 = vst [vmem:[#allocation35_spill] sm:$0xff] %v5719_v28  ;;  %4446 = vmatprep.subr.bf16.mxu0 %v5717_v2  ;;  %v4276_v16 = vsel %vm972_vm9, 1.0, %v6678_v1  ;;  %vm1130_vm10 = vcmp.eq.s32.totalorder %v5629_v17, %v4970_v46  ;;  %vm1134_vm11 = vcmp.eq.s32.totalorder %v5632_v12, %v4970_v46 }
  0xcc   : > { %6752 = vst [vmem:[#allocation36_spill] sm:$0xff] %v5721_v3  ;;  %vm1292_vm12 = vcmp.eq.s32.totalorder %v5629_v17, %v4980_v50  ;;  %v1076_v31 = vadd.f32 %v4272_v8, %v914_v9  ;;  %v1080_v5 = vadd.f32 %v4276_v16, %v918_v13  ;;  %v4309_v11 = vsel %vm1130_vm10, 1.0, %v6678_v1 }
  0xcd   : > { %v4313_v32 = vsel %vm1134_vm11, 1.0, %v6678_v1  ;;  %vm1296_vm13 = vcmp.eq.s32.totalorder %v5632_v12, %v4980_v50  ;;  %v4346_v4 = vsel %vm1292_vm12, 1.0, %v6678_v1  ;;  %vm1454_vm14 = vcmp.eq.s32.totalorder %v5629_v17, %v5003_v59 }
  0xce   : > { %vm1458_vm15 = vcmp.eq.s32.totalorder %v5632_v12, %v5003_v59  ;;  %v1238_v27 = vadd.f32 %v4309_v11, %v1076_v31  ;;  %v1242_v55 = vadd.f32 %v4313_v32, %v1080_v5  ;;  %v4350_v44 = vsel %vm1296_vm13, 1.0, %v6678_v1 }
  0xcf   : > { %v4383_v13 = vsel %vm1454_vm14, 1.0, %v6678_v1  ;;  %v4387_v33 = vsel %vm1458_vm15, 1.0, %v6678_v1  ;;  %vm317_vm0 = vcmp.eq.s32.totalorder %v5629_v17, %v5007_v60  ;;  %vm321_vm1 = vcmp.eq.s32.totalorder %v5632_v12, %v5007_v60 }
  0xd0   : > { %vm479_vm2 = vcmp.eq.s32.totalorder %v5629_v17, %v5011_v63  ;;  %v1400_v47 = vadd.f32 %v4346_v4, %v1238_v27  ;;  %v1404_v9 = vadd.f32 %v4350_v44, %v1242_v55  ;;  %v4121_v8 = vsel %vm317_vm0, 1.0, %v6678_v1 }
  0xd1   : > { %v4125_v16 = vsel %vm321_vm1, 1.0, %v6678_v1  ;;  %vm483_vm3 = vcmp.eq.s32.totalorder %v5632_v12, %v5011_v63  ;;  %v4158_v31 = vsel %vm479_vm2, 1.0, %v6678_v1  ;;  %vm641_vm4 = vcmp.eq.s32.totalorder %v5629_v17, %v5015_v0 }
  0xd2   : > { %vm645_vm5 = vcmp.eq.s32.totalorder %v5632_v12, %v5015_v0  ;;  %v1562_v5 = vadd.f32 %v4383_v13, %v1400_v47  ;;  %v1566_v11 = vadd.f32 %v4387_v33, %v1404_v9  ;;  %v4162_v32 = vsel %vm483_vm3, 1.0, %v6678_v1 }
  0xd3   : > { %v587_v4 = vadd.f32 %v4158_v31, %v4121_v8  ;;  %v591_v27 = vadd.f32 %v4162_v32, %v4125_v16  ;;  %v4195_v55 = vsel %vm641_vm4, 1.0, %v6678_v1  ;;  %v4199_v44 = vsel %vm645_vm5, 1.0, %v6678_v1 }
  0xd4   : > { %vm803_vm6 = vcmp.eq.s32.totalorder %v5629_v17, %v5043_v56  ;;  %v2314_v2 = vand.u32 4294901760, %v1562_v5  ;;  %v2318_v3 = vand.u32 4294901760, %v1566_v11  ;;  %vm807_vm7 = vcmp.eq.s32.totalorder %v5632_v12, %v5043_v56 }
  0xd5   : > { %v749_v28 = vadd.f32 %v4195_v55, %v587_v4  ;;  %v753_v58 = vadd.f32 %v4199_v44, %v591_v27  ;;  %v4232_v13 = vsel %vm803_vm6, 1.0, %v6678_v1  ;;  %v4236_v33 = vsel %vm807_vm7, 1.0, %v6678_v1 }
  0xd6   : > { %vm965_vm8 = vcmp.eq.s32.totalorder %v5629_v17, %v5047_v57  ;;  %v5774_v47 = vpack.c.bf16 %v2318_v3, %v2314_v2  ;;  %v5776_v9 = vsub.f32 %v1562_v5, %v2314_v2  ;;  %v5778_v8 = vsub.f32 %v1566_v11, %v2318_v3 }
  0xd7   : > { %v911_v16 = vadd.f32 %v4232_v13, %v749_v28  ;;  %v915_v31 = vadd.f32 %v4236_v33, %v753_v58  ;;  %vm969_vm9 = vcmp.eq.s32.totalorder %v5632_v12, %v5047_v57  ;;  %v4269_v32 = vsel %vm965_vm8, 1.0, %v6678_v1 }
  0xd8   : > { %6753 = vst [vmem:[#allocation37_spill] sm:$0xff] %v5774_v47  ;;  %6754 = vst [vmem:[#allocation38_spill] sm:$0xff] %v5778_v8  ;;  %vm1127_vm10 = vcmp.eq.s32.totalorder %v5629_v17, %v5057_v26  ;;  %4542 = vmatprep.subr.bf16.mxu1 %v5774_v47  ;;  %v4273_v4 = vsel %vm969_vm9, 1.0, %v6678_v1  ;;  %vm1131_vm11 = vcmp.eq.s32.totalorder %v5632_v12, %v5057_v26 }
  0xd9   : > { %v1073_v27 = vadd.f32 %v4269_v32, %v911_v16  ;;  %v4306_v2 = vsel %vm1127_vm10, 1.0, %v6678_v1  ;;  %v1077_v28 = vadd.f32 %v4273_v4, %v915_v31  ;;  %v4310_v58 = vsel %vm1131_vm11, 1.0, %v6678_v1 }
  0xda   : > { %vm1289_vm12 = vcmp.eq.s32.totalorder %v5629_v17, %v5080_v37  ;;  %vm1293_vm13 = vcmp.eq.s32.totalorder %v5632_v12, %v5080_v37  ;;  %vm1451_vm14 = vcmp.eq.s32.totalorder %v5629_v17, %v5084_v38  ;;  %vm1455_vm15 = vcmp.eq.s32.totalorder %v5632_v12, %v5084_v38 }
  0xdb   : > { %v1235_v3 = vadd.f32 %v4306_v2, %v1073_v27  ;;  %v4343_v5 = vsel %vm1289_vm12, 1.0, %v6678_v1  ;;  %v4347_v11 = vsel %vm1293_vm13, 1.0, %v6678_v1  ;;  %v1239_v55 = vadd.f32 %v4310_v58, %v1077_v28 }
  0xdc   : > { %v4380_v44 = vsel %vm1451_vm14, 1.0, %v6678_v1  ;;  %vm319_vm0 = vcmp.eq.s32.totalorder %v5629_v17, %v5088_v51  ;;  %v4384_v33 = vsel %vm1455_vm15, 1.0, %v6678_v1  ;;  %vm323_vm1 = vcmp.eq.s32.totalorder %v5632_v12, %v5088_v51 }
  0xdd   : > { %v1397_v13 = vadd.f32 %v4343_v5, %v1235_v3  ;;  %v4123_v16 = vsel %vm319_vm0, 1.0, %v6678_v1  ;;  %v1401_v31 = vadd.f32 %v4347_v11, %v1239_v55  ;;  %v4127_v32 = vsel %vm323_vm1, 1.0, %v6678_v1 }
  0xde   : > { %vm481_vm2 = vcmp.eq.s32.totalorder %v5629_v17, %v5092_v52  ;;  %vm485_vm3 = vcmp.eq.s32.totalorder %v5632_v12, %v5092_v52  ;;  %vm643_vm4 = vcmp.eq.s32.totalorder %v5629_v17, %v5118_v34  ;;  %vm647_vm5 = vcmp.eq.s32.totalorder %v5632_v12, %v5118_v34 }
  0xdf   : > { %v1559_v4 = vadd.f32 %v4380_v44, %v1397_v13  ;;  %v4160_v27 = vsel %vm481_vm2, 1.0, %v6678_v1  ;;  %v4164_v2 = vsel %vm485_vm3, 1.0, %v6678_v1  ;;  %v1563_v28 = vadd.f32 %v4384_v33, %v1401_v31 }
  0xe0   : > { %v589_v58 = vadd.f32 %v4160_v27, %v4123_v16  ;;  %v593_v3 = vadd.f32 %v4164_v2, %v4127_v32  ;;  %v4197_v11 = vsel %vm643_vm4, 1.0, %v6678_v1  ;;  %v4201_v55 = vsel %vm647_vm5, 1.0, %v6678_v1 }
  0xe1   : > { %v1643_v5 = vand.u32 4294901760, %v1559_v4  ;;  %vm805_vm6 = vcmp.eq.s32.totalorder %v5629_v17, %v5122_v35  ;;  %v1647_v44 = vand.u32 4294901760, %v1563_v28  ;;  %vm809_vm7 = vcmp.eq.s32.totalorder %v5632_v12, %v5122_v35 }
  0xe2   : > { %v751_v13 = vadd.f32 %v4197_v11, %v589_v58  ;;  %v755_v47 = vadd.f32 %v4201_v55, %v593_v3  ;;  %v4234_v16 = vsel %vm805_vm6, 1.0, %v6678_v1  ;;  %v4238_v31 = vsel %vm809_vm7, 1.0, %v6678_v1 }
  0xe3   : > { %v5825_v33 = vsub.f32 %v1559_v4, %v1643_v5  ;;  %vm967_vm8 = vcmp.eq.s32.totalorder %v5629_v17, %v5146_v6  ;;  %v5831_v32 = vpack.c.bf16 %v1647_v44, %v1643_v5  ;;  %v5833_v27 = vsub.f32 %v1563_v28, %v1647_v44 }
  0xe4   : > { %v913_v2 = vadd.f32 %v4234_v16, %v751_v13  ;;  %v917_v8 = vadd.f32 %v4238_v31, %v755_v47  ;;  %vm971_vm9 = vcmp.eq.s32.totalorder %v5632_v12, %v5146_v6  ;;  %v4271_v58 = vsel %vm967_vm8, 1.0, %v6678_v1 }
  0xe5   : > { %vm1129_vm10 = vcmp.eq.s32.totalorder %v5629_v17, %v5150_v54  ;;  %vm1133_vm11 = vcmp.eq.s32.totalorder %v5632_v12, %v5150_v54  ;;  %4448 = vmatpush1.bf16.msra.mxu0 %v5831_v32  ;;  %v4275_v4 = vsel %vm971_vm9, 1.0, %v6678_v1  ;;  %vm1291_vm12 = vcmp.eq.s32.totalorder %v5629_v17, %v5155_v36 }
  0xe6   : > { %v1075_v3 = vadd.f32 %v4271_v58, %v913_v2  ;;  %v4308_v28 = vsel %vm1129_vm10, 1.0, %v6678_v1  ;;  %v4312_v47 = vsel %vm1133_vm11, 1.0, %v6678_v1  ;;  %v1079_v5 = vadd.f32 %v4275_v4, %v917_v8 }
  0xe7   : > { %vm1295_vm13 = vcmp.eq.s32.totalorder %v5632_v12, %v5155_v36  ;;  %vm1453_vm14 = vcmp.eq.s32.totalorder %v5629_v17, %v5159_v39  ;;  %v4345_v55 = vsel %vm1291_vm12, 1.0, %v6678_v1  ;;  %vm1457_vm15 = vcmp.eq.s32.totalorder %v5632_v12, %v5159_v39 }
  0xe8   : > { %v1237_v11 = vadd.f32 %v4308_v28, %v1075_v3  ;;  %v4349_v44 = vsel %vm1295_vm13, 1.0, %v6678_v1  ;;  %v1241_v13 = vadd.f32 %v4312_v47, %v1079_v5  ;;  %v4382_v8 = vsel %vm1453_vm14, 1.0, %v6678_v1 }
  0xe9   : > { %v4386_v16 = vsel %vm1457_vm15, 1.0, %v6678_v1  ;;  %vm326_vm0 = vcmp.eq.s32.totalorder %v5635_v10, %v4822_v14  ;;  %vm488_vm1 = vcmp.eq.s32.totalorder %v5635_v10, %v4826_v15  ;;  %vm650_vm2 = vcmp.eq.s32.totalorder %v5635_v10, %v4844_v20 }
  0xea   : > { %v1399_v31 = vadd.f32 %v4345_v55, %v1237_v11  ;;  %v4130_v2 = vsel %vm326_vm0, 1.0, %v6678_v1  ;;  %v1403_v17 = vadd.f32 %v4349_v44, %v1241_v13  ;;  %v4167_v12 = vsel %vm488_vm1, 1.0, %v6678_v1 }
  0xeb   : > { %v4204_v58 = vsel %vm650_vm2, 1.0, %v6678_v1  ;;  %vm812_vm3 = vcmp.eq.s32.totalorder %v5635_v10, %v4848_v21  ;;  %v596_v3 = vadd.f32 %v4167_v12, %v4130_v2  ;;  %vm974_vm4 = vcmp.eq.s32.totalorder %v5635_v10, %v4896_v40 }
  0xec   : > { %v1561_v4 = vadd.f32 %v4382_v8, %v1399_v31  ;;  %v4241_v14 = vsel %vm812_vm3, 1.0, %v6678_v1  ;;  %v1565_v28 = vadd.f32 %v4386_v16, %v1403_v17  ;;  %v4278_v15 = vsel %vm974_vm4, 1.0, %v6678_v1 }
  0xed   : > { %vm1136_vm5 = vcmp.eq.s32.totalorder %v5635_v10, %v4900_v41  ;;  %vm1298_vm6 = vcmp.eq.s32.totalorder %v5635_v10, %v4904_v42  ;;  %v758_v47 = vadd.f32 %v4204_v58, %v596_v3  ;;  %vm1460_vm7 = vcmp.eq.s32.totalorder %v5635_v10, %v4908_v43 }
  0xee   : > { %v2316_v20 = vand.u32 4294901760, %v1561_v4  ;;  %v4315_v21 = vsel %vm1136_vm5, 1.0, %v6678_v1  ;;  %v4352_v5 = vsel %vm1298_vm6, 1.0, %v6678_v1  ;;  %v2320_v11 = vand.u32 4294901760, %v1565_v28 }
  0xef   : > { %vm328_vm8 = vcmp.eq.s32.totalorder %v5635_v10, %v4836_v18  ;;  %vm490_vm9 = vcmp.eq.s32.totalorder %v5635_v10, %v4840_v19  ;;  %v920_v41 = vadd.f32 %v4241_v14, %v758_v47  ;;  %v4389_v42 = vsel %vm1460_vm7, 1.0, %v6678_v1 }
  0xf0   : > { %v5885_v40 = vsub.f32 %v1561_v4, %v2316_v20  ;;  %v4132_v55 = vsel %vm328_vm8, 1.0, %v6678_v1  ;;  %v5889_v44 = vpack.c.bf16 %v2320_v11, %v2316_v20  ;;  %v5891_v13 = vsub.f32 %v1565_v28, %v2320_v11 }
  0xf1   : > { %v4169_v8 = vsel %vm490_vm9, 1.0, %v6678_v1  ;;  %vm652_vm10 = vcmp.eq.s32.totalorder %v5635_v10, %v4852_v22  ;;  %v1082_v18 = vadd.f32 %v4278_v15, %v920_v41  ;;  %vm814_vm11 = vcmp.eq.s32.totalorder %v5635_v10, %v4856_v23 }
  0xf2   : > { %6755 = vst [vmem:[#allocation39_spill] sm:$0xff] %v5889_v44  ;;  %v598_v43 = vadd.f32 %v4169_v8, %v4132_v55  ;;  %v4206_v19 = vsel %vm652_vm10, 1.0, %v6678_v1  ;;  %4544 = vmatpush1.bf16.msra.mxu1 %v5889_v44  ;;  %v4243_v16 = vsel %vm814_vm11, 1.0, %v6678_v1  ;;  %vm976_vm12 = vcmp.eq.s32.totalorder %v5635_v10, %v4966_v45 }
  0xf3   : > { %vm1138_vm13 = vcmp.eq.s32.totalorder %v5635_v10, %v4970_v46  ;;  %vm1300_vm14 = vcmp.eq.s32.totalorder %v5635_v10, %v4980_v50  ;;  %v1244_v22 = vadd.f32 %v4315_v21, %v1082_v18  ;;  %v4280_v2 = vsel %vm976_vm12, 1.0, %v6678_v1 }
  0xf4   : > { %v760_v31 = vadd.f32 %v4206_v19, %v598_v43  ;;  %v4317_v17 = vsel %vm1138_vm13, 1.0, %v6678_v1  ;;  %v4354_v23 = vsel %vm1300_vm14, 1.0, %v6678_v1  ;;  %vm1462_vm15 = vcmp.eq.s32.totalorder %v5635_v10, %v5003_v59 }
  0xf5   : > { %vm325_vm0 = vcmp.eq.s32.totalorder %v5635_v10, %v5007_v60  ;;  %vm487_vm1 = vcmp.eq.s32.totalorder %v5635_v10, %v5011_v63  ;;  %v1406_v45 = vadd.f32 %v4352_v5, %v1244_v22  ;;  %v4391_v50 = vsel %vm1462_vm15, 1.0, %v6678_v1 }
  0xf6   : > { %v922_v46 = vadd.f32 %v4243_v16, %v760_v31  ;;  %v4129_v12 = vsel %vm325_vm0, 1.0, %v6678_v1  ;;  %v4166_v58 = vsel %vm487_vm1, 1.0, %v6678_v1  ;;  %vm649_vm2 = vcmp.eq.s32.totalorder %v5635_v10, %v5015_v0 }
  0xf7   : > { %vm811_vm3 = vcmp.eq.s32.totalorder %v5635_v10, %v5043_v56  ;;  %vm973_vm4 = vcmp.eq.s32.totalorder %v5635_v10, %v5047_v57  ;;  %v5925_v59 = vadd.f32 %v4389_v42, %v1406_v45  ;;  %v595_v63 = vadd.f32 %v4166_v58, %v4129_v12 }
  0xf8   : > { %v1084_v60 = vadd.f32 %v4280_v2, %v922_v46  ;;  %v4203_v4 = vsel %vm649_vm2, 1.0, %v6678_v1  ;;  %v4240_v3 = vsel %vm811_vm3, 1.0, %v6678_v1  ;;  %v4277_v14 = vsel %vm973_vm4, 1.0, %v6678_v1 }
  0xf9   : > { %vm1135_vm5 = vcmp.eq.s32.totalorder %v5635_v10, %v5057_v26  ;;  %vm1297_vm6 = vcmp.eq.s32.totalorder %v5635_v10, %v5080_v37  ;;  %v5935_v0 = vand.u32 4294901760, %v5925_v59  ;;  %v757_v57 = vadd.f32 %v4203_v4, %v595_v63 }
  0xfa   : > { %v1246_v56 = vadd.f32 %v4317_v17, %v1084_v60  ;;  %v4314_v28 = vsel %vm1135_vm5, 1.0, %v6678_v1  ;;  %v4351_v15 = vsel %vm1297_vm6, 1.0, %v6678_v1  ;;  %vm1459_vm7 = vcmp.eq.s32.totalorder %v5635_v10, %v5084_v38 }
  0xfb   : > { %6756 = vst [vmem:[#allocation40_spill] sm:$0xff] %v5935_v0  ;;  %vm327_vm8 = vcmp.eq.s32.totalorder %v5635_v10, %v5088_v51  ;;  %vm489_vm9 = vcmp.eq.s32.totalorder %v5635_v10, %v5092_v52  ;;  %1650 = vmatprep.subr.mxu0 %v5935_v0  ;;  %v919_v37 = vadd.f32 %v4240_v3, %v757_v57  ;;  %v4388_v20 = vsel %vm1459_vm7, 1.0, %v6678_v1 }
  0xfc   : > { %v1408_v26 = vadd.f32 %v4354_v23, %v1246_v56  ;;  %v4131_v47 = vsel %vm327_vm8, 1.0, %v6678_v1  ;;  %v4168_v21 = vsel %vm489_vm9, 1.0, %v6678_v1  ;;  %vm651_vm10 = vcmp.eq.s32.totalorder %v5635_v10, %v5118_v34 }
  0xfd   : > { %vm813_vm11 = vcmp.eq.s32.totalorder %v5635_v10, %v5122_v35  ;;  %vm975_vm12 = vcmp.eq.s32.totalorder %v5635_v10, %v5146_v6  ;;  %v1081_v51 = vadd.f32 %v4277_v14, %v919_v37  ;;  %v597_v52 = vadd.f32 %v4168_v21, %v4131_v47 }
  0xfe   : > { %v5955_v38 = vadd.f32 %v4391_v50, %v1408_v26  ;;  %v4205_v5 = vsel %vm651_vm10, 1.0, %v6678_v1  ;;  %v4242_v11 = vsel %vm813_vm11, 1.0, %v6678_v1  ;;  %v4279_v41 = vsel %vm975_vm12, 1.0, %v6678_v1 }
  0xff   : > { %vm1137_vm13 = vcmp.eq.s32.totalorder %v5635_v10, %v5150_v54  ;;  %vm1299_vm14 = vcmp.eq.s32.totalorder %v5635_v10, %v5155_v36  ;;  %v1243_v35 = vadd.f32 %v4314_v28, %v1081_v51  ;;  %v759_v6 = vadd.f32 %v4205_v5, %v597_v52  ;;  %v1612_v36 = vld [vmem:[%s6606_s0] sm:$0xff] }
 0x100   : > { %v5965_v34 = vand.u32 4294901760, %v5955_v38  ;;  %v4316_v42 = vsel %vm1137_vm13, 1.0, %v6678_v1  ;;  %v4353_v55 = vsel %vm1299_vm14, 1.0, %v6678_v1  ;;  %vm1461_vm15 = vcmp.eq.s32.totalorder %v5635_v10, %v5159_v39 }
 0x101   : > { %v6758_v8 = vand.u32 4294901760, %v4974_v48  ;;  %v6693_v54 = vand.u32 4294901760, %v4976_v49  ;;  %v1405_v43 = vadd.f32 %v4351_v15, %v1243_v35  ;;  %v921_v19 = vadd.f32 %v4242_v11, %v759_v6  ;;  %v6761_v35 = vld [vmem:[#allocation13_spill] sm:$0xff] }
 0x102   : > { %6757 = vst [vmem:[#allocation41_spill] sm:$0xff] %v5965_v34  ;;  %2323 = vmatprep.subr.mxu1 %v5965_v34  ;;  %v4390_v16 = vsel %vm1461_vm15, 1.0, %v6678_v1  ;;  %v6692_v22 = vand.u32 4294901760, %v5051_v61  ;;  %v6691_v10 = vand.u32 4294901760, %v5053_v62  ;;  %vm1613_vm0 = vcmask 588800  }
 0x103   : > { %v1714_v18 = vsub.f32 %v4974_v48, %v6758_v8  ;;  %v1726_v39 = vsub.f32 %v4976_v49, %v6693_v54  ;;  %v1567_v2 = vadd.f32 %v4388_v20, %v1405_v43  ;;  %v1083_v17 = vadd.f32 %v4279_v41, %v921_v19  ;;  %v6762_v8 = vld [vmem:[#allocation14_spill] sm:$0xff] }
 0x104   : > { %v2387_v23 = vsub.f32 %v5051_v61, %v6692_v22  ;;  %v1615_v45 = vsel %vm1613_vm0, %v1612_v36, 0  ;;  %v2399_v50 = vsub.f32 %v5053_v62, %v6691_v10  ;;  %v6688_v58 = vand.u32 4294901760, %v5138_v29 }
 0x105   : > { %v1715_v31 = vand.u32 4294901760, %v1714_v18  ;;  %v1727_v46 = vand.u32 4294901760, %v1726_v39  ;;  %v5991_v12 = vand.u32 4294901760, %v1615_v45  ;;  %v5994_v60 = vand.u32 4294901760, %v1567_v2 }
 0x106   : > { %v1245_v63 = vadd.f32 %v4316_v42, %v1083_v17  ;;  %v2388_v4 = vand.u32 4294901760, %v2387_v23  ;;  %v6683_v3 = vand.u32 4294901760, %v5140_v30  ;;  %v2400_v56 = vand.u32 4294901760, %v2399_v50  ;;  %v6764_v50 = vld [vmem:[#allocation16_spill] sm:$0xff] }
 0x107   : > { %6759 = vst [vmem:[#allocation42_spill] sm:$0xff] %v5994_v60  ;;  %v4449_v14 = vpack.c.bf16 %v1727_v46, %v1715_v31  ;;  %v5998_v57 = vsub.f32 %v1615_v45, %v5991_v12  ;;  %v1720_v28 = vsub.f32 %v5138_v29, %v6688_v58  ;;  %1652 = vmatpush1.msra.mxu0 %v5994_v60  ;;  %v6682_v20 = vand.u32 4294901760, %v5218_v24 }
 0x108   : > { %v6005_v15 = vsub.f32 %v1567_v2, %v5994_v60  ;;  %v1407_v26 = vadd.f32 %v4353_v55, %v1245_v63  ;;  %v1732_v37 = vsub.f32 %v5140_v30, %v6683_v3  ;;  %v4545_v47 = vpack.c.bf16 %v2400_v56, %v2388_v4 }
 0x109   : > { %4450 = vmatprep.subr.bf16.mxu0 %v4449_v14  ;;  %v6012_v21 = vand.u32 4294901760, %v5998_v57  ;;  %v1721_v51 = vand.u32 4294901760, %v1720_v28  ;;  %v6677_v52 = vand.u32 4294901760, %v5220_v25  ;;  %v2393_v41 = vsub.f32 %v5218_v24, %v6682_v20 }
 0x10a   : > { %v1569_v5 = vadd.f32 %v4390_v16, %v1407_v26  ;;  %v1733_v11 = vand.u32 4294901760, %v1732_v37  ;;  %v6675_v6 = vand.u32 4294901760, %v6761_v35  ;;  %v6674_v18 = vand.u32 4294901760, %v6762_v8  ;;  %v6765_v26 = vld [vmem:[#allocation18_spill] sm:$0xff] }
 0x10b   : > { %6760 = vst [vmem:[#allocation43_spill] sm:$0xff] %v6012_v21  ;;  %v1703_v42 = vsub.f32 %v5998_v57, %v6012_v21  ;;  %v2405_v55 = vsub.f32 %v5220_v25, %v6677_v52  ;;  %v6673_v36 = vand.u32 4294901760, %v5326_v7  ;;  %v2394_v16 = vand.u32 4294901760, %v2393_v41 }
 0x10c   : > { %v6026_v43 = vand.u32 4294901760, %v1569_v5  ;;  %v4451_v19 = vpack.c.bf16 %v1733_v11, %v1721_v51  ;;  %v1738_v31 = vsub.f32 %v6761_v35, %v6675_v6  ;;  %v1750_v17 = vsub.f32 %v6762_v8, %v6674_v18  ;;  %v6766_v11 = vld [vmem:[#allocation19_spill] sm:$0xff] }
 0x10d   : > { %v1704_v39 = vand.u32 4294901760, %v1703_v42  ;;  %v2406_v2 = vand.u32 4294901760, %v2405_v55  ;;  %v2411_v23 = vsub.f32 %v5326_v7, %v6673_v36  ;;  %v6671_v63 = vand.u32 4294901760, %v6764_v50  ;;  %v6767_v42 = vld [vmem:[#allocation21_spill] sm:$0xff]  ;;  %v6771_v18 = vld [vmem:[#allocation27_spill] sm:$0xff] }
 0x10e   : > { %6763 = vst [vmem:[#allocation13_spill] sm:$0xff] %v6026_v43  ;;  %2325 = vmatpush1.msra.mxu1 %v6026_v43  ;;  %v6039_v45 = vsub.f32 %v1569_v5, %v6026_v43  ;;  %v1739_v46 = vand.u32 4294901760, %v1738_v31  ;;  %v6669_v4 = vand.u32 4294901760, %v5375_v53  ;;  %v1751_v56 = vand.u32 4294901760, %v1750_v17 }
 0x10f   : > { %4546 = vmatprep.subr.bf16.mxu1 %v4545_v47  ;;  %1705 = vmatmul.mubr.f32.vlgmr.msra.gmra.mrb[0].mxu0 %v1704_v39  ;;  %v4547_v14 = vpack.c.bf16 %v2406_v2, %v2394_v16  ;;  %v2412_v28 = vand.u32 4294901760, %v2411_v23  ;;  %v6670_v37 = vand.u32 4294901760, %v6765_v26  ;;  %v2423_v51 = vsub.f32 %v6764_v50, %v6671_v63 }
 0x110   : > { %4452 = vmatpush1.bf16.msra.mxu0 %v4451_v19  ;;  %2378 = vmatmul.mubr.f32.vlgmr.msra.gmra.mrb[0].mxu1 %v1704_v39  ;;  %v1744_v5 = vsub.f32 %v5375_v53, %v6669_v4  ;;  %v6672_v41 = vand.u32 4294901760, %v6766_v11  ;;  %v6676_v47 = vand.u32 4294901760, %v6767_v42  ;;  %v4453_v55 = vpack.c.bf16 %v1751_v56, %v1739_v46  ;;  %v6768_v19 = vld [vmem:[#allocation23_spill] sm:$0xff]  ;;  %v6769_v39 = vld [vmem:[#allocation24_spill] sm:$0xff] }
 0x111   : > { %4548 = vmatpush1.bf16.msra.mxu1 %v4547_v14  ;;  %v1756_v16 = vsub.f32 %v6765_v26, %v6670_v37  ;;  %v6681_v31 = vand.u32 4294901760, %v6768_v19  ;;  %v6680_v2 = vand.u32 4294901760, %v6769_v39  ;;  %1865 = vmatprep.mubr.f32.mxu0 %v6678_v1  ;;  %v2424_v17 = vand.u32 4294901760, %v2423_v51 }
 0x112   : > { %v1745_v23 = vand.u32 4294901760, %v1744_v5  ;;  %v2417_v4 = vsub.f32 %v6766_v11, %v6672_v41  ;;  %v2429_v46 = vsub.f32 %v6767_v42, %v6676_v47  ;;  %2538 = vmatprep.mubr.f32.mxu1 %v6678_v1  ;;  %4454 = vmatprep.subr.bf16.mxu0 %v4453_v55  ;;  %v6770_v5 = vld [vmem:[#allocation26_spill] sm:$0xff]  ;;  %v6684_v6 = vand.u32 4294901760, %v6771_v18 }
 0x113   : > { %v1757_v14 = vand.u32 4294901760, %v1756_v16  ;;  %v1762_v56 = vsub.f32 %v6768_v19, %v6681_v31  ;;  %v1774_v51 = vsub.f32 %v6769_v39, %v6680_v2  ;;  %v6686_v37 = vand.u32 4294901760, %v6770_v5  ;;  %v6772_v31 = vld [vmem:[#allocation28_spill] sm:$0xff] }
 0x114   : > { %v4549_v63 = vpack.c.bf16 %v2424_v17, %v2412_v28  ;;  %v2418_v41 = vand.u32 4294901760, %v2417_v4  ;;  %v2430_v36 = vand.u32 4294901760, %v2429_v46  ;;  %v2447_v2 = vsub.f32 %v6771_v18, %v6684_v6  ;;  %v6773_v28 = vld [vmem:[#allocation30_spill] sm:$0xff] }
 0x115   : > { %v4455_v47 = vpack.c.bf16 %v1757_v14, %v1745_v23  ;;  %v1763_v52 = vand.u32 4294901760, %v1762_v56  ;;  %v1775_v1 = vand.u32 4294901760, %v1774_v51  ;;  %v2435_v55 = vsub.f32 %v6770_v5, %v6686_v37  ;;  %v6774_v23 = vld [vmem:[#allocation31_spill] sm:$0xff]  ;;  %v6775_v56 = vld [vmem:[#allocation33_spill] sm:$0xff] }
 0x116   : > { %4550 = vmatprep.subr.bf16.mxu1 %v4549_v63  ;;  %v4551_v16 = vpack.c.bf16 %v2430_v36, %v2418_v41  ;;  %v6685_v20 = vand.u32 4294901760, %v6772_v31  ;;  %v6687_v4 = vand.u32 4294901760, %v6773_v28  ;;  %v6689_v14 = vand.u32 4294901760, %v6774_v23  ;;  %v6776_v41 = vld [vmem:[#allocation35_spill] sm:$0xff] }
 0x117   : > { %4456 = vmatpush1.bf16.msra.mxu0 %v4455_v47  ;;  %v4457_v17 = vpack.c.bf16 %v1775_v1, %v1763_v52  ;;  %v2436_v46 = vand.u32 4294901760, %v2435_v55  ;;  %v6690_v51 = vand.u32 4294901760, %v6775_v56  ;;  %v2448_v3 = vand.u32 4294901760, %v2447_v2  ;;  %v6777_v47 = vld [vmem:[#allocation36_spill] sm:$0xff] }
 0x118   : > { %4552 = vmatpush1.bf16.msra.mxu1 %v4551_v16  ;;  %v1768_v36 = vsub.f32 %v6772_v31, %v6685_v20  ;;  %v1780_v63 = vsub.f32 %v6773_v28, %v6687_v4  ;;  %v6694_v6 = vand.u32 4294901760, %v6776_v41  ;;  %v2441_v1 = vsub.f32 %v6774_v23, %v6689_v14 }
 0x119   : > { %4458 = vmatprep.subr.bf16.mxu0 %v4457_v17  ;;  %v2453_v52 = vsub.f32 %v6775_v56, %v6690_v51  ;;  %v6705_v2 = vand.u32 4294901760, %v6777_v47  ;;  %v6698_v55 = vand.u32 4294901760, %v5776_v9  ;;  %v4553_v16 = vpack.c.bf16 %v2448_v3, %v2436_v46  ;;  %v6778_v3 = vld [vmem:[#allocation38_spill] sm:$0xff] }
 0x11a   : > { %v1769_v20 = vand.u32 4294901760, %v1768_v36  ;;  %v1781_v37 = vand.u32 4294901760, %v1780_v63  ;;  %v1786_v4 = vsub.f32 %v6776_v41, %v6694_v6  ;;  %v2442_v17 = vand.u32 4294901760, %v2441_v1 }
 0x11b   : > { %v2454_v58 = vand.u32 4294901760, %v2453_v52  ;;  %v1798_v14 = vsub.f32 %v6777_v47, %v6705_v2  ;;  %v2459_v51 = vsub.f32 %v5776_v9, %v6698_v55  ;;  %4554 = vmatprep.subr.bf16.mxu1 %v4553_v16  ;;  %v6697_v46 = vand.u32 4294901760, %v6778_v3 }
 0x11c   : > { %v4459_v10 = vpack.c.bf16 %v1781_v37, %v1769_v20  ;;  %v1787_v22 = vand.u32 4294901760, %v1786_v4  ;;  %v6695_v36 = vand.u32 4294901760, %v5825_v33  ;;  %v6696_v1 = vand.u32 4294901760, %v5833_v27 }
 0x11d   : > { %v4555_v63 = vpack.c.bf16 %v2454_v58, %v2442_v17  ;;  %v1799_v54 = vand.u32 4294901760, %v1798_v14  ;;  %v2460_v6 = vand.u32 4294901760, %v2459_v51  ;;  %v2471_v52 = vsub.f32 %v6778_v3, %v6697_v46 }
 0x11e   : > { %4460 = vmatpush1.bf16.msra.mxu0 %v4459_v10  ;;  %v1792_v16 = vsub.f32 %v5825_v33, %v6695_v36  ;;  %v6699_v20 = vand.u32 4294901760, %v5885_v40  ;;  %v6700_v37 = vand.u32 4294901760, %v5891_v13  ;;  %v1804_v58 = vsub.f32 %v5833_v27, %v6696_v1 }
 0x11f   : > { %4556 = vmatpush1.bf16.msra.mxu1 %v4555_v63  ;;  %v4461_v4 = vpack.c.bf16 %v1799_v54, %v1787_v22  ;;  %v6123_v10 = vsub.f32 %v5925_v59, %v5935_v0  ;;  %v6127_v14 = vsub.f32 %v5955_v38, %v5965_v34  ;;  %v2472_v51 = vand.u32 4294901760, %v2471_v52 }
 0x120   : > { %v1793_v17 = vand.u32 4294901760, %v1792_v16  ;;  %v2465_v36 = vsub.f32 %v5885_v40, %v6699_v20  ;;  %v2477_v54 = vsub.f32 %v5891_v13, %v6700_v37  ;;  %v1805_v22 = vand.u32 4294901760, %v1804_v58 }
 0x121   : > { %4462 = vmatprep.subr.bf16.mxu0 %v4461_v4  ;;  %v6704_v63 = vand.u32 4294901760, %v6123_v10  ;;  %v6701_v59 = vand.u32 4294901760, %v6127_v14  ;;  %v6703_v1 = vand.u32 4294901760, %v6005_v15  ;;  %v4557_v38 = vpack.c.bf16 %v2472_v51, %v2460_v6 }
 0x122   : > { %v2466_v46 = vand.u32 4294901760, %v2465_v36  ;;  %v2478_v52 = vand.u32 4294901760, %v2477_v54  ;;  %v6702_v16 = vand.u32 4294901760, %v6039_v45  ;;  %v4463_v55 = vpack.c.bf16 %v1805_v22, %v1793_v17 }
 0x123   : > { %v1810_v20 = vsub.f32 %v6123_v10, %v6704_v63  ;;  %v2483_v4 = vsub.f32 %v6127_v14, %v6701_v59  ;;  %v1816_v58 = vsub.f32 %v6005_v15, %v6703_v1  ;;  %4558 = vmatprep.subr.bf16.mxu1 %v4557_v38  ;;  %v4465_v36 = vpack.c.bf16 %v4976_v49, %v4974_v48 }
 0x124   : > { %v4559_v37 = vpack.c.bf16 %v2478_v52, %v2466_v46  ;;  %v2489_v6 = vsub.f32 %v6039_v45, %v6702_v16  ;;  %v4561_v51 = vpack.c.bf16 %v5053_v62, %v5051_v61  ;;  %4464 = vmatpush1.bf16.msra.mxu0 %v4463_v55  ;;  %v4467_v59 = vpack.c.bf16 %v5140_v30, %v5138_v29 }
 0x125   : > { %v1811_v17 = vand.u32 4294901760, %v1810_v20  ;;  %v2484_v54 = vand.u32 4294901760, %v2483_v4  ;;  %v1817_v22 = vand.u32 4294901760, %v1816_v58  ;;  %v4563_v46 = vpack.c.bf16 %v5220_v25, %v5218_v24 }
 0x126   : > { %4560 = vmatpush1.bf16.msra.mxu1 %v4559_v37  ;;  %v2490_v38 = vand.u32 4294901760, %v2489_v6  ;;  %v4469_v52 = vpack.c.bf16 %v6762_v8, %v6761_v35  ;;  %v4565_v16 = vpack.c.bf16 %v6764_v50, %v5326_v7  ;;  %v4471_v55 = vpack.c.bf16 %v6765_v26, %v5375_v53 }
 0x127   : > { %1812 = vmatprep.subr.mxu0 %v1811_v17  ;;  %2485 = vmatprep.subr.mxu1 %v2484_v54  ;;  %v4567_v20 = vpack.c.bf16 %v6767_v42, %v6766_v11  ;;  %v4473_v37 = vpack.c.bf16 %v6769_v39, %v6768_v19  ;;  %v4569_v4 = vpack.c.bf16 %v6771_v18, %v6770_v5  ;;  %v6779_v1 = vand.u32 4294901760, %v4974_v48 }
 0x128   : > { %v4475_v58 = vpack.c.bf16 %v6773_v28, %v6772_v31  ;;  %v4571_v6 = vpack.c.bf16 %v6775_v56, %v6774_v23  ;;  %v4477_v17 = vpack.c.bf16 %v6777_v47, %v6776_v41  ;;  %1818 = vmatpush1.msra.mxu0 %v1817_v22  ;;  %v4573_v54 = vpack.c.bf16 %v6778_v3, %v5776_v9 }
 0x129   : > { %v6780_v63 = vand.u32 4294901760, %v4976_v49  ;;  %4466 = vmatprep.subr.bf16.mxu0 %v4465_v36  ;;  %v6781_v21 = vand.u32 4294901760, %v5051_v61  ;;  %v6782_v43 = vand.u32 4294901760, %v5053_v62  ;;  %v6783_v34 = vand.u32 4294901760, %v5138_v29  ;;  %1867 = vmatmul.mubr.f32.vlgmr.msra.gmra.mrb[0].mxu0 %v5991_v12 }
 0x12a   : > { %2491 = vmatpush1.msra.mxu1 %v2490_v38  ;;  %v6784_v22 = vand.u32 4294901760, %v5140_v30  ;;  %v6785_v44 = vand.u32 4294901760, %v5218_v24  ;;  %v6786_v48 = vand.u32 4294901760, %v5220_v25  ;;  %v6787_v61 = vand.u32 4294901760, %v6761_v35  ;;  %4468 = vmatpush1.bf16.msra.mxu0 %v4467_v59 }
 0x12b   : > { %v6183_v2 = vpack.c.bf16 %v6780_v63, %v6779_v1  ;;  %v4593_v60 = vpack.c.bf16 %v6782_v43, %v6781_v21  ;;  %4562 = vmatprep.subr.bf16.mxu1 %v4561_v51  ;;  %v6788_v62 = vand.u32 4294901760, %v6762_v8  ;;  %v6789_v29 = vand.u32 4294901760, %v5326_v7  ;;  %2540 = vmatmul.mubr.f32.vlgmr.msra.gmra.mrb[0].mxu1 %v5991_v12 }
 0x12c   : > { %v6193_v0 = vpack.c.bf16 %v6784_v22, %v6783_v34  ;;  %v6199_v49 = vpack.c.bf16 %v6786_v48, %v6785_v44  ;;  %v6790_v30 = vand.u32 4294901760, %v6764_v50  ;;  %v6791_v43 = vand.u32 4294901760, %v5375_v53  ;;  %4564 = vmatpush1.bf16.msra.mxu1 %v4563_v46  ;;  %4470 = vmatprep.subr.bf16.mxu0 %v4469_v52  ;;  %v6813_v52 = vld [vmem:[#allocation15_spill] sm:$0xff]  ;;  %v6823_v22 = vld [vmem:[#allocation40_spill] sm:$0xff]  ;;  %v6824_v48 = vld [vmem:[#allocation41_spill] sm:$0xff] }
 0x12d   : > { %v4501_v21 = vpack.c.bf16 %v6788_v62, %v6787_v61  ;;  %v6792_v24 = vand.u32 4294901760, %v6765_v26  ;;  %v6793_v44 = vand.u32 4294901760, %v6766_v11  ;;  %v6794_v35 = vand.u32 4294901760, %v6767_v42  ;;  %4566 = vmatprep.subr.bf16.mxu1 %v4565_v16  ;;  %v6812_v16 = vld [vmem:[#allocation12_spill] sm:$0xff]  ;;  %v6825_v61 = vld [vmem:[#allocation42_spill] sm:$0xff]  ;;  %v6826_v62 = vld [vmem:[#allocation13_spill] sm:$0xff] }
 0x12e   : > { %v4597_v34 = vpack.c.bf16 %v6790_v30, %v6789_v29  ;;  %v6795_v7 = vand.u32 4294901760, %v6768_v19  ;;  %v6796_v50 = vand.u32 4294901760, %v6769_v39  ;;  %v6797_v53 = vand.u32 4294901760, %v6770_v5  ;;  %4472 = vmatpush1.bf16.msra.mxu0 %v4471_v55  ;;  %v6814_v55 = vld [vmem:[#allocation17_spill] sm:$0xff]  ;;  %v6827_v29 = vld [vmem:[#allocation43_spill] sm:$0xff] }
 0x12f   : > { %v6214_v25 = vpack.c.bf16 %v6792_v24, %v6791_v43  ;;  %v6221_v8 = vpack.c.bf16 %v6794_v35, %v6793_v44  ;;  %v6798_v26 = vand.u32 4294901760, %v6771_v18  ;;  %v6799_v11 = vand.u32 4294901760, %v6772_v31  ;;  %4474 = vmatprep.subr.bf16.mxu0 %v4473_v37  ;;  %v6816_v37 = vld [vmem:[#allocation22_spill] sm:$0xff]  ;;  %v6832_v43 = vld [vmem:[#allocation3_spill] sm:$0xff] }
 0x130   : > { %v6227_v1 = vpack.c.bf16 %v6796_v50, %v6795_v7  ;;  %v6800_v42 = vand.u32 4294901760, %v6773_v28  ;;  %v6801_v36 = vand.u32 4294901760, %v6774_v23  ;;  %v6802_v19 = vand.u32 4294901760, %v6775_v56  ;;  %4568 = vmatpush1.bf16.msra.mxu1 %v4567_v20  ;;  %v6815_v20 = vld [vmem:[#allocation20_spill] sm:$0xff]  ;;  %v6838_v7 = vld [vmem:[#allocation2_spill] sm:$0xff]  ;;  %v6839_v50 = vld [vmem:[#allocation5_spill] sm:$0xff] }
 0x131   : > { %v6233_v63 = vpack.c.bf16 %v6798_v26, %v6797_v53  ;;  %v6803_v51 = vand.u32 4294901760, %v6776_v41  ;;  %v6804_v5 = vand.u32 4294901760, %v6777_v47  ;;  %v6805_v38 = vmov 0.0   ;;  %4570 = vmatprep.subr.bf16.mxu1 %v4569_v4  ;;  %v6809_v41 = vld [vmem:[#allocation9_spill] sm:$0xff]  ;;  %v6810_v47 = vld [vmem:[#allocation10_spill] sm:$0xff] }
 0x132   : > { %v4507_v59 = vpack.c.bf16 %v6800_v42, %v6799_v11  ;;  %v6243_v39 = vpack.c.bf16 %v6802_v19, %v6801_v36  ;;  %1973 = vmatprep.mubr.f32.mxu0 %v6805_v38  ;;  %v6806_v31 = vand.u32 4294901760, %v5776_v9  ;;  %v6807_v28 = vand.u32 4294901760, %v6778_v3  ;;  %2646 = vmatprep.mubr.f32.mxu1 %v6805_v38  ;;  %v6808_v9 = vld [vmem:[#allocation8_spill] sm:$0xff]  ;;  %v6811_v3 = vld [vmem:[#allocation11_spill] sm:$0xff]  ;;  %v6817_v4 = vld [vmem:[#allocation25_spill] sm:$0xff] }
 0x133   : > { %v6249_v18 = vpack.c.bf16 %v6804_v5, %v6803_v51  ;;  %4476 = vmatpush1.bf16.msra.mxu0 %v4475_v58  ;;  %v4479_v23 = vpack.c.bf16 %v5833_v27, %v5825_v33  ;;  %v4575_v56 = vpack.c.bf16 %v5891_v13, %v5885_v40  ;;  %v6818_v58 = vld [vmem:[#allocation29_spill] sm:$0xff]  ;;  %v6831_v30 = vand.u32 4294901760, %v5891_v13 }
 0x134   : > { %v6256_v46 = vpack.c.bf16 %v6807_v28, %v6806_v31  ;;  %4572 = vmatpush1.bf16.msra.mxu1 %v4571_v6  ;;  %4478 = vmatprep.subr.bf16.mxu0 %v4477_v17  ;;  %v6820_v6 = vld [vmem:[#allocation34_spill] sm:$0xff]  ;;  %v6821_v17 = vld [vmem:[#allocation37_spill] sm:$0xff]  ;;  %v6835_v35 = vand.u32 4294901760, %v6123_v10  ;;  %v6837_v13 = vand.u32 4294901760, %v6127_v14  ;;  %vm2964_vm5 = vcmask 130048  }
 0x135   : > { %4574 = vmatprep.subr.bf16.mxu1 %v4573_v54  ;;  %v6822_v54 = vld [vmem:[#allocation39_spill] sm:$0xff]  ;;  %vm3980_vm14 = vcmask 523264  }
 0x137   : > { %4480 = vmatpush1.bf16.msra.mxu0 %v4479_v23 }
 0x138   : > { %4576 = vmatpush1.bf16.msra.mxu1 %v4575_v56  ;;  %1923 = vmatprep.subr.mxu0 %v6123_v10  ;;  %v2963_v10 = vld [vmem:[%s6607_s1] sm:$0xff] }
 0x139   : > { %2596 = vmatprep.subr.mxu1 %v6127_v14  ;;  %v6840_v14 = vand.u32 4294901760, %v6005_v15 }
 0x13b   : > { %1926 = vmatpush1.msra.mxu0 %v6005_v15 }
 0x13c   : > { %2599 = vmatpush1.msra.mxu1 %v6039_v45  ;;  %4482 = vmatprep.subr.bf16.mxu0 %v6808_v9 }
 0x13d   : > { %4578 = vmatprep.subr.bf16.mxu1 %v6809_v41  ;;  %1976 = vmatmul.mubr.f32.vlgmr.msra.gmra.mrb[0].mxu0 %v5998_v57 }
 0x13e   : > { %4484 = vmatpush1.bf16.msra.mxu0 %v6810_v47  ;;  %2649 = vmatmul.mubr.f32.vlgmr.msra.gmra.mrb[0].mxu1 %v5998_v57  ;;  %v6819_v57 = vld [vmem:[#allocation32_spill] sm:$0xff] }
 0x13f   : > { %4580 = vmatpush1.bf16.msra.mxu1 %v6811_v3  ;;  %4486 = vmatprep.subr.bf16.mxu0 %v6812_v16 }
 0x140   : > { %4582 = vmatprep.subr.bf16.mxu1 %v6813_v52  ;;  %2064 = vmatprep.mubr.f32.mxu0 %v6805_v38 }
 0x141   : > { %2737 = vmatprep.mubr.f32.mxu1 %v6805_v38 }
 0x142   : > { %4488 = vmatpush1.bf16.msra.mxu0 %v6814_v55 }
 0x143   : > { %4584 = vmatpush1.bf16.msra.mxu1 %v6815_v20  ;;  %4490 = vmatprep.subr.bf16.mxu0 %v6816_v37 }
 0x144   : > { %4586 = vmatprep.subr.bf16.mxu1 %v6817_v4 }
 0x146   : > { %4492 = vmatpush1.bf16.msra.mxu0 %v6818_v58 }
 0x147   : > { %4588 = vmatpush1.bf16.msra.mxu1 %v6819_v57  ;;  %4494 = vmatprep.subr.bf16.mxu0 %v6820_v6 }
 0x148   : > { %4590 = vmatprep.subr.bf16.mxu1 %v6821_v17 }
 0x14a   : > { %4496 = vmatpush1.bf16.msra.mxu0 %v5831_v32 }
 0x14b   : > { %4592 = vmatpush1.bf16.msra.mxu1 %v6822_v54  ;;  %2015 = vmatprep.subr.mxu0 %v6823_v22 }
 0x14c   : > { %2688 = vmatprep.subr.mxu1 %v6824_v48 }
 0x14e   : > { %2017 = vmatpush1.msra.mxu0 %v6825_v61 }
 0x14f   : > { %2690 = vmatpush1.msra.mxu1 %v6826_v62  ;;  %4498 = vmatprep.subr.bf16.mxu0 %v6183_v2  ;;  %v6829_v2 = vand.u32 4294901760, %v5833_v27 }
 0x150   : > { %4594 = vmatprep.subr.bf16.mxu1 %v4593_v60  ;;  %2068 = vmatmul.mubr.f32.vlgmr.msra.gmra.mrb[0].mxu0 %v6827_v29  ;;  %v6828_v60 = vand.u32 4294901760, %v5825_v33  ;;  %v6834_v33 = vld [vmem:[#allocation6_spill] sm:$0xff] }
 0x151   : > { %4500 = vmatpush1.bf16.msra.mxu0 %v6193_v0  ;;  %2741 = vmatmul.mubr.f32.vlgmr.msra.gmra.mrb[0].mxu1 %v6827_v29  ;;  %v1571_v0 = vld [vmem:[%s253_s29] sm:$0xf] }
 0x152   : > { %4596 = vmatpush1.bf16.msra.mxu1 %v6199_v49  ;;  %4502 = vmatprep.subr.bf16.mxu0 %v4501_v21  ;;  %v4511_v49 = vpack.c.bf16 %v6829_v2, %v6828_v60  ;;  %v6830_v21 = vand.u32 4294901760, %v5885_v40  ;;  %v6318_v24 = vrot.slane %v1571_v0, %v6832_v43  ;;  %v6324_v27 = vrot.slane %v1571_v0, %v6834_v33  ;;  %v6836_v40 = vld [vmem:[#allocation7_spill] sm:$0xff] }
 0x153   : > { %4598 = vmatprep.subr.bf16.mxu1 %v4597_v34  ;;  %2192 = vmatprep.mubr.f32.mxu0 %v6805_v38 }
 0x154   : > { %2865 = vmatprep.mubr.f32.mxu1 %v6805_v38  ;;  %v4607_v34 = vpack.c.bf16 %v6831_v30, %v6830_v21  ;;  %vm1589_vm1 = vcmp.eq.s32.totalorder %v6838_v7, %v6318_v24  ;;  %vm1593_vm2 = vcmp.eq.s32.totalorder %v6839_v50, %v6318_v24  ;;  %vm1588_vm6 = vcmp.eq.s32.totalorder %v6838_v7, %v6324_v27 }
 0x155   : > { %4504 = vmatpush1.bf16.msra.mxu0 %v6214_v25  ;;  %v6833_v25 = vld [vmem:[#allocation4_spill] sm:$0xff]  ;;  %vm1592_vm7 = vcmp.eq.s32.totalorder %v6839_v50, %v6324_v27  ;;  %v4393_v53 = vsel %vm1589_vm1, 1.0, %v6805_v38  ;;  %v4397_v15 = vsel %vm1593_vm2, 1.0, %v6805_v38  ;;  %v4392_v11 = vsel %vm1588_vm6, 1.0, %v6805_v38  ;;  %vm6472_vm10 = vmpackc.low %vm1593_vm2, %vm1589_vm1 }
 0x156   : > { %4600 = vmatpush1.bf16.msra.mxu1 %v6221_v8  ;;  %4506 = vmatprep.subr.bf16.mxu0 %v6227_v1  ;;  %v6321_v44 = vrot.slane %v1571_v0, %v6833_v25  ;;  %v6329_v8 = vrot.slane %v1571_v0, %v6836_v40  ;;  %v6841_v1 = vand.u32 4294901760, %v6039_v45  ;;  %v4396_v42 = vsel %vm1592_vm7, 1.0, %v6805_v38  ;;  %vm6495_vm12 = vmpackc.low %vm1592_vm7, %vm1588_vm6 }
 0x157   : > { %4602 = vmatprep.subr.bf16.mxu1 %v6233_v63  ;;  %v2966_v63 = vsel %vm2964_vm5, %v2963_v10, 0  ;;  %v6389_v36 = vsub.f32 %v4397_v15, %v4397_v15  ;;  %v6408_v31 = vsub.f32 %v4392_v11, %v4392_v11  ;;  %v6410_v28 = vsub.f32 %v4396_v42, %v4396_v42 }
 0x158   : > { %vm1591_vm3 = vcmp.eq.s32.totalorder %v6838_v7, %v6321_v44  ;;  %vm1595_vm4 = vcmp.eq.s32.totalorder %v6839_v50, %v6321_v44  ;;  %vm1590_vm8 = vcmp.eq.s32.totalorder %v6838_v7, %v6329_v8  ;;  %vm1594_vm9 = vcmp.eq.s32.totalorder %v6839_v50, %v6329_v8 }
 0x159   : > { %4508 = vmatpush1.bf16.msra.mxu0 %v4507_v59  ;;  %v4395_v45 = vsel %vm1591_vm3, 1.0, %v6805_v38  ;;  %v4399_v26 = vsel %vm1595_vm4, 1.0, %v6805_v38  ;;  %v6387_v59 = vsub.f32 %v4393_v53, %v4393_v53  ;;  %v4394_v19 = vsel %vm1590_vm8, 1.0, %v6805_v38  ;;  %vm6484_vm11 = vmpackc.low %vm1595_vm4, %vm1591_vm3 }
 0x15a   : > { %4604 = vmatpush1.bf16.msra.mxu1 %v6243_v39  ;;  %4510 = vmatprep.subr.bf16.mxu0 %v6249_v18  ;;  %v4398_v39 = vsel %vm1594_vm9, 1.0, %v6805_v38  ;;  %v6401_v51 = vsub.f32 %v4395_v45, %v4395_v45  ;;  %v6403_v5 = vsub.f32 %v4399_v26, %v4399_v26  ;;  %v6405_v18 = vand.u32 4294901760, %v2966_v63  ;;  %vm6507_vm13 = vmpackc.low %vm1594_vm9, %vm1590_vm8 }
 0x15b   : > { %4606 = vmatprep.subr.bf16.mxu1 %v6256_v46  ;;  %v6413_v46 = vsub.f32 %v4394_v19, %v4394_v19  ;;  %v6415_v23 = vsub.f32 %v4398_v39, %v4398_v39  ;;  %v3050_v56 = vand.u32 4294901760, %v6387_v59 }
 0x15c   : > { %v4657_v50 = vpack.c.bf16 %v6403_v5, %v6401_v51 }
 0x15d   : > { %4512 = vmatpush1.bf16.msra.mxu0 %v4511_v49 }
 0x15e   : > { %4608 = vmatpush1.bf16.msra.mxu1 %v4607_v34  ;;  %2141 = vmatprep.subr.mxu0 %v6835_v35 }
 0x15f   : > { %2814 = vmatprep.subr.mxu1 %v6837_v13  ;;  %v4733_v13 = vmov 1.0|1.0  }
 0x161   : > { %2145 = vmatpush1.msra.mxu0 %v6840_v14  ;;  %v4635_v14 = vpack.c.bf16 %v6410_v28, %v6408_v31 }
 0x162   : > { %2818 = vmatpush1.msra.mxu1 %v6841_v1  ;;  %4514 = vmatprep.subr.bf16.mxu0 %v6808_v9  ;;  %v3062_v9 = vand.u32 4294901760, %v6389_v36  ;;  %v4659_v1 = vpack.c.bf16 %v6415_v23, %v6413_v46 }
 0x163   : > { %4610 = vmatprep.subr.bf16.mxu1 %v6809_v41  ;;  %2194 = vmatmul.mubr.f32.vlgmr.msra.gmra.mrb[0].mxu0 %v5991_v12  ;;  %v6423_v41 = vsub.f32 %v2966_v63, %v6405_v18 }
 0x164   : > { %4516 = vmatpush1.bf16.msra.mxu0 %v6810_v47  ;;  %2867 = vmatmul.mubr.f32.vlgmr.msra.gmra.mrb[0].mxu1 %v5991_v12  ;;  %v3541_v47 = vand.u32 4294901760, %v6401_v51  ;;  %v4641_v53 = vpack.c.bf16 %v3062_v9, %v3050_v56 }
 0x165   : > { %4612 = vmatpush1.bf16.msra.mxu1 %v6811_v3  ;;  %4518 = vmatprep.subr.bf16.mxu0 %v6812_v16  ;;  %v3553_v3 = vand.u32 4294901760, %v6403_v5  ;;  %v3056_v16 = vand.u32 4294901760, %v6408_v31 }
 0x166   : > { %4614 = vmatprep.subr.bf16.mxu1 %v6813_v52  ;;  %2282 = vmatprep.mubr.f32.mxu0 %v6805_v38  ;;  %v3068_v52 = vand.u32 4294901760, %v6410_v28  ;;  %v3542_v29 = vsub.f32 %v6401_v51, %v3541_v47 }
 0x167   : > { %2955 = vmatprep.mubr.f32.mxu1 %v6805_v38  ;;  %v4665_v15 = vpack.c.bf16 %v3553_v3, %v3541_v47 }
 0x168   : > { %4520 = vmatpush1.bf16.msra.mxu0 %v6814_v55  ;;  %v3547_v55 = vand.u32 4294901760, %v6413_v46  ;;  %v3069_v0 = vsub.f32 %v6410_v28, %v3068_v52  ;;  %v4643_v45 = vpack.c.bf16 %v3068_v52, %v3056_v16 }
 0x169   : > { %4616 = vmatpush1.bf16.msra.mxu1 %v6815_v20  ;;  %4522 = vmatprep.subr.bf16.mxu0 %v6816_v37  ;;  %v3559_v20 = vand.u32 4294901760, %v6415_v23  ;;  %v3051_v37 = vsub.f32 %v6387_v59, %v3050_v56 }
 0x16a   : > { %4618 = vmatprep.subr.bf16.mxu1 %v6817_v4  ;;  %v3063_v4 = vsub.f32 %v6389_v36, %v3062_v9  ;;  %v3070_v34 = vand.u32 4294901760, %v3069_v0 }
 0x16b   : > { %v3560_v60 = vsub.f32 %v6415_v23, %v3559_v20  ;;  %v3052_v2 = vand.u32 4294901760, %v3051_v37  ;;  %v4667_v26 = vpack.c.bf16 %v3559_v20, %v3547_v55 }
 0x16c   : > { %4524 = vmatpush1.bf16.msra.mxu0 %v6818_v58  ;;  %v6442_v58 = vand.u32 4294901760, %v6423_v41  ;;  %v3064_v49 = vand.u32 4294901760, %v3063_v4 }
 0x16d   : > { %4620 = vmatpush1.bf16.msra.mxu1 %v6819_v57  ;;  %4526 = vmatprep.subr.bf16.mxu0 %v6820_v6  ;;  %v3554_v57 = vsub.f32 %v6403_v5, %v3553_v3  ;;  %v3057_v6 = vsub.f32 %v6408_v31, %v3056_v16  ;;  %v3561_v44 = vand.u32 4294901760, %v3560_v60 }
 0x16e   : > { %4622 = vmatprep.subr.bf16.mxu1 %v6821_v17  ;;  %v3548_v17 = vsub.f32 %v6413_v46, %v3547_v55  ;;  %v3040_v21 = vsub.f32 %v6423_v41, %v6442_v58  ;;  %v4629_v27 = vpack.c.bf16 %v3064_v49, %v3052_v2 }
 0x16f   : > { %v3555_v30 = vand.u32 4294901760, %v3554_v57 }
 0x170   : > { %4528 = vmatpush1.bf16.msra.mxu0 %v5831_v32  ;;  %v3549_v35 = vand.u32 4294901760, %v3548_v17 }
 0x171   : > { %4624 = vmatpush1.bf16.msra.mxu1 %v6822_v54  ;;  %2233 = vmatprep.subr.mxu0 %v6823_v22  ;;  %v3543_v54 = vand.u32 4294901760, %v3542_v29 }
 0x172   : > { %2906 = vmatprep.subr.mxu1 %v6824_v48  ;;  %v3058_v48 = vand.u32 4294901760, %v3057_v6  ;;  %v4655_v7 = vpack.c.bf16 %v3561_v44, %v3549_v35 }
 0x173   : > { %v4653_v10 = vpack.c.bf16 %v3555_v30, %v3543_v54 }
 0x174   : > { %2235 = vmatpush1.msra.mxu0 %v6825_v61  ;;  %v4631_v8 = vpack.c.bf16 %v3070_v34, %v3058_v48 }
 0x175   : > { %2908 = vmatpush1.msra.mxu1 %v6826_v62  ;;  %2284 = vmatmul.mubr.f32.vlgmr.msra.gmra.mrb[0].mxu0 %v5991_v12  ;;  %v3041_v62 = vand.u32 4294901760, %v3040_v21 }
 0x176   : > { %2957 = vmatmul.mubr.f32.vlgmr.msra.gmra.mrb[0].mxu1 %v5991_v12  ;;  %4626 = vmatprep.subr.msk.bf16.mxu0 %vm6472_vm10, %v4733_v13  ;;  %v4633_v12 = vpack.c.bf16 %v6389_v36, %v6387_v59  ;;  %v3950_v36 = vld [vmem:[%s258_s10] sm:$0xf] }
 0x177   : > { %4650 = vmatprep.subr.msk.bf16.mxu1 %vm6484_vm11, %v4733_v13  ;;  %4628 = vmatpush1.bf16.msk.msra.mxu0 %vm6495_vm12, %v4733_v13  ;;  %v3955_v19 = vrot.slane %v3950_v36, %v6834_v33  ;;  %v3959_v39 = vrot.slane %v3950_v36, %v6832_v43  ;;  %v3967_v51 = vrot.slane %v3950_v36, %v6833_v25 }
 0x178   : > { %4652 = vmatpush1.bf16.msk.msra.mxu1 %vm6507_vm13, %v4733_v13  ;;  %3036 = vmatprep.mubr.f32.mxu0 %v6805_v38 }
 0x179   : > { %3527 = vmatprep.mubr.f32.mxu1 %v6805_v38  ;;  %4630 = vmatprep.subr.bf16.mxu0 %v4629_v27 }
 0x17a   : > { %3042 = vmatmul.mubr.f32.vlgmr.msra.gmra.mrb[2].mxu0 %v3041_v62  ;;  %4654 = vmatprep.subr.bf16.mxu1 %v4653_v10 }
 0x17b   : > { %3533 = vmatmul.mubr.f32.vlgmr.msra.gmra.mrb[2].mxu1 %v3041_v62  ;;  %4632 = vmatpush1.bf16.msra.mxu0 %v4631_v8 }
 0x17c   : > { %4656 = vmatpush1.bf16.msra.mxu1 %v4655_v7  ;;  %3132 = vmatprep.mubr.f32.mxu0 %v6805_v38 }
 0x17d   : > { %3623 = vmatprep.mubr.f32.mxu1 %v6805_v38  ;;  %4634 = vmatprep.subr.bf16.mxu0 %v4633_v12 }
 0x17e   : > { %4658 = vmatprep.subr.bf16.mxu1 %v4657_v50 }
 0x182   : > { %3134 = vmatmul.mubr.f32.vlgmr.msra.gmra.mrb[2].mxu0 %v6405_v18 }
 0x183   : > { %3625 = vmatmul.mubr.f32.vlgmr.msra.gmra.mrb[2].mxu1 %v6405_v18  ;;  %4636 = vmatpush1.bf16.msra.mxu0 %v4635_v14 }
 0x184   : > { %4660 = vmatpush1.bf16.msra.mxu1 %v4659_v1  ;;  %3212 = vmatprep.mubr.f32.mxu0 %v6805_v38 }
 0x185   : > { %3703 = vmatprep.mubr.f32.mxu1 %v6805_v38  ;;  %4638 = vmatprep.subr.msk.bf16.mxu0 %vm6472_vm10, %v4733_v13 }
 0x186   : > { %4662 = vmatprep.subr.msk.bf16.mxu1 %vm6484_vm11, %v4733_v13 }
 0x18a   : > { %3215 = vmatmul.mubr.f32.vlgmr.msra.gmra.mrb[2].mxu0 %v6423_v41 }
 0x18b   : > { %3706 = vmatmul.mubr.f32.vlgmr.msra.gmra.mrb[2].mxu1 %v6423_v41  ;;  %4640 = vmatpush1.bf16.msk.msra.mxu0 %vm6495_vm12, %v4733_v13 }
 0x18c   : > { %4664 = vmatpush1.bf16.msk.msra.mxu1 %vm6507_vm13, %v4733_v13  ;;  %3289 = vmatprep.mubr.f32.mxu0 %v6805_v38 }
 0x18d   : > { %3780 = vmatprep.mubr.f32.mxu1 %v6805_v38  ;;  %4642 = vmatprep.subr.bf16.mxu0 %v4641_v53 }
 0x18e   : > { %4666 = vmatprep.subr.bf16.mxu1 %v4665_v15 }
 0x192   : > { %3293 = vmatmul.mubr.f32.vlgmr.msra.gmra.mrb[2].mxu0 %v6442_v58 }
 0x193   : > { %3784 = vmatmul.mubr.f32.vlgmr.msra.gmra.mrb[2].mxu1 %v6442_v58  ;;  %4644 = vmatpush1.bf16.msra.mxu0 %v4643_v45 }
 0x194   : > { %4668 = vmatpush1.bf16.msra.mxu1 %v4667_v26  ;;  %3375 = vmatprep.mubr.f32.mxu0 %v6805_v38 }
 0x195   : > { %3866 = vmatprep.mubr.f32.mxu1 %v6805_v38  ;;  %4646 = vmatprep.subr.msk.bf16.mxu0 %vm6472_vm10, %v4733_v13 }
 0x196   : > { %4670 = vmatprep.subr.msk.bf16.mxu1 %vm6484_vm11, %v4733_v13 }
 0x19a   : > { %3377 = vmatmul.mubr.f32.vlgmr.msra.gmra.mrb[2].mxu0 %v6405_v18 }
 0x19b   : > { %3868 = vmatmul.mubr.f32.vlgmr.msra.gmra.mrb[2].mxu1 %v6405_v18  ;;  %4648 = vmatpush1.bf16.msk.msra.mxu0 %vm6495_vm12, %v4733_v13 }
 0x19c   : > { %4672 = vmatpush1.bf16.msk.msra.mxu1 %vm6507_vm13, %v4733_v13  ;;  %3451 = vmatprep.mubr.f32.mxu0 %v6805_v38 }
 0x19d   : > { %3942 = vmatprep.mubr.f32.mxu1 %v6805_v38  ;;  %v3963_v38 = vrot.slane %v3950_v36, %v6836_v40 }
 0x1a2   : > { %3453 = vmatmul.mubr.f32.vlgmr.msra.gmra.mrb[2].mxu0 %v6405_v18 }
 0x1a3   : > { %3944 = vmatmul.mubr.f32.vlgmr.msra.gmra.mrb[2].mxu1 %v6405_v18 }
 0x248   : > { %v2285_v63 = vpop.f32.mrb[0].mxu0 }
 0x249   : > { %v2958_v11 = vpop.f32.mrb[0].mxu1  ;;  %v2287_v42 = vpop.f32.mrb[1].mxu0  ;;  %v3972_v5 = vmul.f32 %v3955_v19, %v2285_v63 }
 0x24a   : > { %v2960_v59 = vpop.f32.mrb[1].mxu1  ;;  %v3974_v18 = vmul.f32 %v3963_v38, %v2958_v11  ;;  %v3973_v31 = vmul.f32 %v3959_v39, %v2287_v42 }
 0x24b   : > { %v3975_v46 = vmul.f32 %v3967_v51, %v2960_v59 }
 0x275   : > { %v3454_v28 = vpop.f32.mrb[2].mxu0 }
 0x276   : > { %v3976_v23 = vadd.f32 %v3972_v5, %v3454_v28  ;;  %v3945_v56 = vpop.f32.mrb[2].mxu1  ;;  %v3456_v33 = vpop.f32.mrb[3].mxu0 }
 0x277   : > { %v3978_v9 = vadd.f32 %v3974_v18, %v3945_v56  ;;  %v3977_v40 = vadd.f32 %v3973_v31, %v3456_v33  ;;  %v3947_v41 = vpop.f32.mrb[3].mxu1 }
 0x278   : > { %3981 = vst.msk [vmem:[%s264_s14] sm:$0xff] %vm3980_vm14, %v3976_v23  ;;  %v3979_v43 = vadd.f32 %v3975_v46, %v3947_v41  ;;  %3983 = vrot.lane.b32.xlu0 %v3976_v23, %s4734_s15 }
 0x279   : > { %4427 = vst.msk [vmem:[%s264_s14 + $0x20] sm:$0xff] %vm3980_vm14, %v3978_v9  ;;  %4425 = vst.msk [vmem:[%s264_s14 + $0x10] sm:$0xff] %vm3980_vm14, %v3977_v40  ;;  %3999 = vrot.lane.b32.xlu1 %v3978_v9, %s4734_s15 }
 0x27a   : > { %4429 = vst.msk [vmem:[%s264_s14 + $0x30] sm:$0xff] %vm3980_vm14, %v3979_v43 }
 0x27c   : > { %3991 = vrot.lane.b32.xlu0 %v3977_v40, %s4734_s15 }
 0x27d   : > { %4007 = vrot.lane.b32.xlu1 %v3979_v43, %s4734_s15 }
 0x2ea   : > { %v3984_v25 = vpop.permute.xlu0 %3983 }
 0x2eb   : > { %v4000_v47 = vpop.permute.xlu1 %3999  ;;  %4424 = vst.msk [vmem:[%s264_s14 + $0x8] sm:$0xff] %vm3980_vm14, %v3984_v25 }
 0x2ec   : > { %4428 = vst.msk [vmem:[%s264_s14 + $0x28] sm:$0xff] %vm3980_vm14, %v4000_v47 }
 0x2ee   : > { %v3992_v3 = vpop.permute.xlu0 %3991 }
 0x2ef   : > { %v4008_v16 = vpop.permute.xlu1 %4007  ;;  %4426 = vst.msk [vmem:[%s264_s14 + $0x18] sm:$0xff] %vm3980_vm14, %v3992_v3 }
 0x2f0   : > { %4430 = vst.msk [vmem:[%s264_s14 + $0x38] sm:$0xff] %vm3980_vm14, %v4008_v16 }
 0x2f1 PF: > { %s15_s18 = sadd.s32 1, %s4730_s18  }
 0x2f2   : > { %p12_p5 = scmp.ge.s32.totalorder %s15_s18, 4  }
 0x2f4   :  { %14 = sbr.rel (!%p12_p5) target bundleno = 1 (0x1), region = 90 }

</bundles_post_ra>
